<compile_context>
chip_gen: v7x
topology: tpu7x:2x2x1
jax: 0.10.0
libtpu: 0.0.40
codegen_flags: <defaults>
</compile_context>

<pallas_src>
import functools

import jax
import jax.numpy as jnp
from jax.experimental import pallas as pl
from jax.experimental.pallas import tpu as pltpu

KERNEL_SIZES = (3, 4, 5)
F_PAD = 128   # num_filters (100) padded to a full lane tile
NC_PAD = 128  # num_classes (11) padded to a full lane tile


# ----------------------------------------------------------------------------
# The single fused kernel.
# ----------------------------------------------------------------------------
def _lstmcnn_kernel(tok_ref, emb_ref, wih_ref, bih_ref, whh_ref,
                    w3_ref, w4_ref, w5_ref, cb3_ref, cb4_ref, cb5_ref,
                    lw_ref, lb_ref, out_ref, h2_sc):
    B, T = tok_ref.shape
    E = emb_ref.shape[-1]
    H2, G4 = whh_ref.shape                     # (2H, 4H)
    H = H2 // 2
    F = w3_ref.shape[-1]

    # ---- embedding gather: tokens are SMEM scalars, table resident in VMEM.
    # Row order (t, b) so the projection output maps cleanly onto timesteps.
    rows = []
    for t in range(T):
        for b in range(B):
            tok = tok_ref[b, t]
            rows.append(emb_ref[tok].astype(jnp.float32))        # (1, E)
    x = jnp.concatenate(rows, axis=0)                            # (T*B, E) f32

    # ---- input projection for all timesteps and BOTH directions: one matmul.
    proj = jnp.dot(x.astype(jnp.bfloat16), wih_ref[...],
                   preferred_element_type=jnp.float32) + bih_ref[...]  # (T*B, 8H)

    # ---- bidirectional LSTM recurrence, fully unrolled in-kernel.
    # Packed block-diagonal state: rows 0:B = [h_fwd | 0], rows B:2B = [0 | h_bwd];
    # whh_stack = [[W_hh_f^T], [W_hh_b^T]] so ONE (2B,2H)x(2H,4H) MXU op per step
    # covers both directions.  Gate order matches PyTorch: [i, f, g, o].
    h2_sc[...] = jnp.zeros(h2_sc.shape, h2_sc.dtype)
    c = jnp.zeros((2 * B, H), jnp.float32)
    whh = whh_ref[...]                                           # hoisted load
    lane = jax.lax.broadcasted_iota(jnp.int32, (2 * B, G4), 1)   # hoisted mask
    g_sel = (lane >= 2 * H) & (lane < 3 * H)                     # tanh (g) lanes

    hf = [None] * T   # forward hidden per time step, (B, H) f32
    hb = [None] * T   # backward hidden per time step, (B, H) f32
    for t in range(T):
        pf = proj[t * B:(t + 1) * B, 0:G4]                       # fwd proj @ t
        pb = proj[(T - 1 - t) * B:(T - t) * B, G4:2 * G4]        # bwd proj @ T-1-t
        rec = jnp.dot(h2_sc[...].astype(jnp.bfloat16), whh,
                      preferred_element_type=jnp.float32)        # (2B, 4H)
        gates = jnp.concatenate([pf, pb], axis=0) + rec
        # single EUP pass: tanh(x) = 2*sigmoid(2x) - 1, lane-mask select
        s = jax.nn.sigmoid(jnp.where(g_sel, 2.0 * gates, gates))
        act = jnp.where(g_sel, 2.0 * s - 1.0, s)
        i_g = act[:, 0:H]
        f_g = act[:, H:2 * H]
        g_g = act[:, 2 * H:3 * H]
        o_g = act[:, 3 * H:4 * H]
        c = f_g * c + i_g * g_g
        h_new = o_g * jnp.tanh(c)                                # (2B, H) f32
        # rebuild the block-diagonal state with two sub-block stores
        # (off-diagonal blocks stay zero from the init).
        h2_sc[0:B, 0:H] = h_new[0:B, :]
        h2_sc[B:2 * B, H:2 * H] = h_new[B:2 * B, :]
        hf[t] = h_new[0:B, :]
        hb[T - 1 - t] = h_new[B:2 * B, :]

    # lstm_output[t]: fwd in channels 0:H, bwd in channels H:2H (PyTorch order)
    hcat = [jnp.concatenate([hf[t], hb[t]], axis=1) for t in range(T)]  # (B, 2H)

    # ---- conv(k) + ReLU + global maxpool + linear: one fat matmul per k.
    w_refs = (w3_ref, w4_ref, w5_ref)
    cb_refs = (cb3_ref, cb4_ref, cb5_ref)
    total = jnp.zeros((B, out_ref.shape[-1]), jnp.float32) + lb_ref[...]
    for idx, ksz in enumerate(KERNEL_SIZES):
        t_out = T - ksz + 1
        # unfold the k taps into the contraction dim: lhs (t_out*B, k*2H)
        lhs = jnp.concatenate(
            [jnp.concatenate([hcat[p + j] for j in range(ksz)], axis=1)
             for p in range(t_out)], axis=0)
        conv = jnp.dot(lhs.astype(jnp.bfloat16), w_refs[idx][...],
                       preferred_element_type=jnp.float32) + cb_refs[idx][...]
        conv = jnp.maximum(conv, 0.0)                            # ReLU, (t_out*B, F)
        pooled = conv[0:B, :]
        for p in range(1, t_out):                                # global max pool
            pooled = jnp.maximum(pooled, conv[p * B:(p + 1) * B, :])
        total = total + jnp.dot(pooled.astype(jnp.bfloat16),
                                lw_ref[idx * F:(idx + 1) * F, :],
                                preferred_element_type=jnp.float32)
    out_ref[...] = total                                         # (B, NC_PAD) f32


# ----------------------------------------------------------------------------
# Wrapper: one pallas_call, lane-dense padded output sliced outside the kernel.
# ----------------------------------------------------------------------------
@functools.partial(jax.jit, static_argnames=("num_classes",))
def lstmcnn_forward(tokens, params, *, num_classes):
    B, T = tokens.shape
    assert T >= max(KERNEL_SIZES), "valid conv requires T >= max kernel size"
    H = params["w_hh_stack"].shape[0] // 2

    vmem = pl.BlockSpec(memory_space=pltpu.MemorySpace.VMEM)
    smem = pl.BlockSpec(memory_space=pltpu.MemorySpace.SMEM)

    out_padded = pl.pallas_call(
        _lstmcnn_kernel,
        out_shape=jax.ShapeDtypeStruct((B, NC_PAD), jnp.float32),
        in_specs=[smem] + [vmem] * 12,
        out_specs=vmem,
        scratch_shapes=[pltpu.VMEM((2 * B, 2 * H), jnp.float32)],
    )(tokens,
      params["embedding"], params["w_ih_all"], params["b_all"],
      params["w_hh_stack"],
      params["conv_w"][0], params["conv_w"][1], params["conv_w"][2],
      params["conv_b"][0], params["conv_b"][1], params["conv_b"][2],
      params["lin_w"], params["lin_b"])

    return out_padded[:, :num_classes]


# ----------------------------------------------------------------------------
# Parameter construction: PyTorch-layout init, then layout transform / padding.
# ----------------------------------------------------------------------------
def init_torch_layout_params(key, num_embeddings, E, H, num_classes, num_filters):
    ks = jax.random.split(key, 18)
    s = 0.1
    C = 2 * H
    return {
        "embedding": jax.random.normal(ks[0], (num_embeddings, E)) * s,
        "w_ih_f": jax.random.normal(ks[1], (4 * H, E)) * s,
        "w_hh_f": jax.random.normal(ks[2], (4 * H, H)) * s,
        "b_ih_f": jax.random.normal(ks[3], (4 * H,)) * s,
        "b_hh_f": jax.random.normal(ks[4], (4 * H,)) * s,
        "w_ih_b": jax.random.normal(ks[5], (4 * H, E)) * s,
        "w_hh_b": jax.random.normal(ks[6], (4 * H, H)) * s,
        "b_ih_b": jax.random.normal(ks[7], (4 * H,)) * s,
        "b_hh_b": jax.random.normal(ks[8], (4 * H,)) * s,
        "conv_w": [jax.random.normal(ks[9 + i], (num_filters, C, k)) * s
                   for i, k in enumerate(KERNEL_SIZES)],
        "conv_b": [jax.random.normal(ks[12 + i], (num_filters,)) * s
                   for i in range(len(KERNEL_SIZES))],
        "lin_w": jax.random.normal(ks[15], (num_classes,
                                            len(KERNEL_SIZES) * num_filters)) * s,
        "lin_b": jax.random.normal(ks[16], (num_classes,)) * s,
    }


def prepare_params(tp, num_filters):
    """Torch-layout weights -> fused-kernel layout (bf16 MXU operands,
    tap-unfolded conv weights, filters/classes padded to 128 lanes)."""
    F = num_filters
    pad_f = F_PAD - F
    H = tp["w_hh_f"].shape[1]
    C = 2 * H

    w_ih_all = jnp.concatenate([tp["w_ih_f"].T, tp["w_ih_b"].T], axis=1)    # (E, 8H)
    b_all = jnp.concatenate([tp["b_ih_f"] + tp["b_hh_f"],
                             tp["b_ih_b"] + tp["b_hh_b"]])[None, :]         # (1, 8H)
    w_hh_stack = jnp.concatenate([tp["w_hh_f"].T, tp["w_hh_b"].T], axis=0)  # (2H, 4H)

    conv_w, conv_b = [], []
    for w, b in zip(tp["conv_w"], tp["conv_b"]):
        k = w.shape[-1]
        # (F, C, k) -> (k, C, F) -> (k*C, F): row j*C + c = weight[:, c, j]
        w_unf = jnp.transpose(w, (2, 1, 0)).reshape(k * C, F)
        w_unf = jnp.pad(w_unf, ((0, 0), (0, pad_f)))                        # F -> 128
        conv_w.append(w_unf.astype(jnp.bfloat16))
        conv_b.append(jnp.pad(b, (0, pad_f))[None, :].astype(jnp.float32))  # (1, 128)

    nc = tp["lin_w"].shape[0]
    pad_nc = NC_PAD - nc
    lw_t = tp["lin_w"].T                                                    # (3F, nc)
    blocks = [jnp.pad(lw_t[i * F:(i + 1) * F], ((0, pad_f), (0, pad_nc)))
              for i in range(len(KERNEL_SIZES))]
    lin_w = jnp.concatenate(blocks, axis=0).astype(jnp.bfloat16)            # (384, 128)
    lin_b = jnp.pad(tp["lin_b"], (0, pad_nc))[None, :].astype(jnp.float32)  # (1, 128)

    return {
        # (V, 1, E): leading axis untiled -> clean in-kernel dynamic row gather
        "embedding": tp["embedding"].astype(jnp.bfloat16)[:, None, :],
        "w_ih_all": w_ih_all.astype(jnp.bfloat16),
        "b_all": b_all.astype(jnp.float32),
        "w_hh_stack": w_hh_stack.astype(jnp.bfloat16),
        "conv_w": conv_w,
        "conv_b": conv_b,
        "lin_w": lin_w,
        "lin_b": lin_b,
    }


if __name__ == "__main__":
    num_classes = 11          # len(labels) in the reference module
    num_embeddings = 50       # small synthetic vocab
    E = 32                    # embedding_size
    H = 32                    # hidden_size
    num_filters = 100
    B, T = 2, 8

    key = jax.random.PRNGKey(0)
    pkey, tkey = jax.random.split(key)
    torch_params = init_torch_layout_params(pkey, num_embeddings, E, H,
                                            num_classes, num_filters)
    params = prepare_params(torch_params, num_filters)
    tokens = jax.random.randint(tkey, (B, T), 0, num_embeddings, dtype=jnp.int32)

    logits = lstmcnn_forward(tokens, params, num_classes=num_classes)
    jax.block_until_ready(logits)
    assert logits.shape == (B, num_classes)
    assert bool(jnp.all(jnp.isfinite(logits)))
    print("KERNEL_OK")
</pallas_src>

<mosaic_0001>
module attributes {stable_mosaic.version = 11 : i64} {
  func.func @_lstmcnn_kernel(%arg0: memref<2x8xi32, #tpu.memory_space<smem>>, %arg1: memref<50x1x32xbf16, #tpu.memory_space<vmem>>, %arg2: memref<32x256xbf16, #tpu.memory_space<vmem>>, %arg3: memref<1x256xf32, #tpu.memory_space<vmem>>, %arg4: memref<64x128xbf16, #tpu.memory_space<vmem>>, %arg5: memref<192x128xbf16, #tpu.memory_space<vmem>>, %arg6: memref<256x128xbf16, #tpu.memory_space<vmem>>, %arg7: memref<320x128xbf16, #tpu.memory_space<vmem>>, %arg8: memref<1x128xf32, #tpu.memory_space<vmem>>, %arg9: memref<1x128xf32, #tpu.memory_space<vmem>>, %arg10: memref<1x128xf32, #tpu.memory_space<vmem>>, %arg11: memref<384x128xbf16, #tpu.memory_space<vmem>>, %arg12: memref<1x128xf32, #tpu.memory_space<vmem>>, %arg13: memref<2x128xf32, #tpu.memory_space<vmem>>, %arg14: memref<4x64xf32, #tpu.memory_space<vmem>>) attributes {dimension_semantics = [], scalar_prefetch = 0 : i64, scratch_operands = 1 : i64, tpu.core_type = #tpu.core_type<tc>} {
    %c0 = arith.constant 0 : index
    %c0_0 = arith.constant 0 : index
    %0 = memref.load %arg0[%c0, %c0_0] : memref<2x8xi32, #tpu.memory_space<smem>>
    %1 = arith.index_cast %0 : i32 to index
    %c0_1 = arith.constant 0 : index
    %c0_2 = arith.constant 0 : index
    %2 = vector.load %arg1[%1, %c0_1, %c0_2] : memref<50x1x32xbf16, #tpu.memory_space<vmem>>, vector<1x1x32xbf16>
    %3 = vector.shape_cast %2 : vector<1x1x32xbf16> to vector<1x32xbf16>
    %4 = arith.extf %3 : vector<1x32xbf16> to vector<1x32xf32>
    %c1 = arith.constant 1 : index
    %c0_3 = arith.constant 0 : index
    %5 = memref.load %arg0[%c1, %c0_3] : memref<2x8xi32, #tpu.memory_space<smem>>
    %6 = arith.index_cast %5 : i32 to index
    %c0_4 = arith.constant 0 : index
    %c0_5 = arith.constant 0 : index
    %7 = vector.load %arg1[%6, %c0_4, %c0_5] : memref<50x1x32xbf16, #tpu.memory_space<vmem>>, vector<1x1x32xbf16>
    %8 = vector.shape_cast %7 : vector<1x1x32xbf16> to vector<1x32xbf16>
    %9 = arith.extf %8 : vector<1x32xbf16> to vector<1x32xf32>
    %c0_6 = arith.constant 0 : index
    %c1_7 = arith.constant 1 : index
    %10 = memref.load %arg0[%c0_6, %c1_7] : memref<2x8xi32, #tpu.memory_space<smem>>
    %11 = arith.index_cast %10 : i32 to index
    %c0_8 = arith.constant 0 : index
    %c0_9 = arith.constant 0 : index
    %12 = vector.load %arg1[%11, %c0_8, %c0_9] : memref<50x1x32xbf16, #tpu.memory_space<vmem>>, vector<1x1x32xbf16>
    %13 = vector.shape_cast %12 : vector<1x1x32xbf16> to vector<1x32xbf16>
    %14 = arith.extf %13 : vector<1x32xbf16> to vector<1x32xf32>
    %c1_10 = arith.constant 1 : index
    %c1_11 = arith.constant 1 : index
    %15 = memref.load %arg0[%c1_10, %c1_11] : memref<2x8xi32, #tpu.memory_space<smem>>
    %16 = arith.index_cast %15 : i32 to index
    %c0_12 = arith.constant 0 : index
    %c0_13 = arith.constant 0 : index
    %17 = vector.load %arg1[%16, %c0_12, %c0_13] : memref<50x1x32xbf16, #tpu.memory_space<vmem>>, vector<1x1x32xbf16>
    %18 = vector.shape_cast %17 : vector<1x1x32xbf16> to vector<1x32xbf16>
    %19 = arith.extf %18 : vector<1x32xbf16> to vector<1x32xf32>
    %c0_14 = arith.constant 0 : index
    %c2 = arith.constant 2 : index
    %20 = memref.load %arg0[%c0_14, %c2] : memref<2x8xi32, #tpu.memory_space<smem>>
    %21 = arith.index_cast %20 : i32 to index
    %c0_15 = arith.constant 0 : index
    %c0_16 = arith.constant 0 : index
    %22 = vector.load %arg1[%21, %c0_15, %c0_16] : memref<50x1x32xbf16, #tpu.memory_space<vmem>>, vector<1x1x32xbf16>
    %23 = vector.shape_cast %22 : vector<1x1x32xbf16> to vector<1x32xbf16>
    %24 = arith.extf %23 : vector<1x32xbf16> to vector<1x32xf32>
    %c1_17 = arith.constant 1 : index
    %c2_18 = arith.constant 2 : index
    %25 = memref.load %arg0[%c1_17, %c2_18] : memref<2x8xi32, #tpu.memory_space<smem>>
    %26 = arith.index_cast %25 : i32 to index
    %c0_19 = arith.constant 0 : index
    %c0_20 = arith.constant 0 : index
    %27 = vector.load %arg1[%26, %c0_19, %c0_20] : memref<50x1x32xbf16, #tpu.memory_space<vmem>>, vector<1x1x32xbf16>
    %28 = vector.shape_cast %27 : vector<1x1x32xbf16> to vector<1x32xbf16>
    %29 = arith.extf %28 : vector<1x32xbf16> to vector<1x32xf32>
    %c0_21 = arith.constant 0 : index
    %c3 = arith.constant 3 : index
    %30 = memref.load %arg0[%c0_21, %c3] : memref<2x8xi32, #tpu.memory_space<smem>>
    %31 = arith.index_cast %30 : i32 to index
    %c0_22 = arith.constant 0 : index
    %c0_23 = arith.constant 0 : index
    %32 = vector.load %arg1[%31, %c0_22, %c0_23] : memref<50x1x32xbf16, #tpu.memory_space<vmem>>, vector<1x1x32xbf16>
    %33 = vector.shape_cast %32 : vector<1x1x32xbf16> to vector<1x32xbf16>
    %34 = arith.extf %33 : vector<1x32xbf16> to vector<1x32xf32>
    %c1_24 = arith.constant 1 : index
    %c3_25 = arith.constant 3 : index
    %35 = memref.load %arg0[%c1_24, %c3_25] : memref<2x8xi32, #tpu.memory_space<smem>>
    %36 = arith.index_cast %35 : i32 to index
    %c0_26 = arith.constant 0 : index
    %c0_27 = arith.constant 0 : index
    %37 = vector.load %arg1[%36, %c0_26, %c0_27] : memref<50x1x32xbf16, #tpu.memory_space<vmem>>, vector<1x1x32xbf16>
    %38 = vector.shape_cast %37 : vector<1x1x32xbf16> to vector<1x32xbf16>
    %39 = arith.extf %38 : vector<1x32xbf16> to vector<1x32xf32>
    %c0_28 = arith.constant 0 : index
    %c4 = arith.constant 4 : index
    %40 = memref.load %arg0[%c0_28, %c4] : memref<2x8xi32, #tpu.memory_space<smem>>
    %41 = arith.index_cast %40 : i32 to index
    %c0_29 = arith.constant 0 : index
    %c0_30 = arith.constant 0 : index
    %42 = vector.load %arg1[%41, %c0_29, %c0_30] : memref<50x1x32xbf16, #tpu.memory_space<vmem>>, vector<1x1x32xbf16>
    %43 = vector.shape_cast %42 : vector<1x1x32xbf16> to vector<1x32xbf16>
    %44 = arith.extf %43 : vector<1x32xbf16> to vector<1x32xf32>
    %c1_31 = arith.constant 1 : index
    %c4_32 = arith.constant 4 : index
    %45 = memref.load %arg0[%c1_31, %c4_32] : memref<2x8xi32, #tpu.memory_space<smem>>
    %46 = arith.index_cast %45 : i32 to index
    %c0_33 = arith.constant 0 : index
    %c0_34 = arith.constant 0 : index
    %47 = vector.load %arg1[%46, %c0_33, %c0_34] : memref<50x1x32xbf16, #tpu.memory_space<vmem>>, vector<1x1x32xbf16>
    %48 = vector.shape_cast %47 : vector<1x1x32xbf16> to vector<1x32xbf16>
    %49 = arith.extf %48 : vector<1x32xbf16> to vector<1x32xf32>
    %c0_35 = arith.constant 0 : index
    %c5 = arith.constant 5 : index
    %50 = memref.load %arg0[%c0_35, %c5] : memref<2x8xi32, #tpu.memory_space<smem>>
    %51 = arith.index_cast %50 : i32 to index
    %c0_36 = arith.constant 0 : index
    %c0_37 = arith.constant 0 : index
    %52 = vector.load %arg1[%51, %c0_36, %c0_37] : memref<50x1x32xbf16, #tpu.memory_space<vmem>>, vector<1x1x32xbf16>
    %53 = vector.shape_cast %52 : vector<1x1x32xbf16> to vector<1x32xbf16>
    %54 = arith.extf %53 : vector<1x32xbf16> to vector<1x32xf32>
    %c1_38 = arith.constant 1 : index
    %c5_39 = arith.constant 5 : index
    %55 = memref.load %arg0[%c1_38, %c5_39] : memref<2x8xi32, #tpu.memory_space<smem>>
    %56 = arith.index_cast %55 : i32 to index
    %c0_40 = arith.constant 0 : index
    %c0_41 = arith.constant 0 : index
    %57 = vector.load %arg1[%56, %c0_40, %c0_41] : memref<50x1x32xbf16, #tpu.memory_space<vmem>>, vector<1x1x32xbf16>
    %58 = vector.shape_cast %57 : vector<1x1x32xbf16> to vector<1x32xbf16>
    %59 = arith.extf %58 : vector<1x32xbf16> to vector<1x32xf32>
    %c0_42 = arith.constant 0 : index
    %c6 = arith.constant 6 : index
    %60 = memref.load %arg0[%c0_42, %c6] : memref<2x8xi32, #tpu.memory_space<smem>>
    %61 = arith.index_cast %60 : i32 to index
    %c0_43 = arith.constant 0 : index
    %c0_44 = arith.constant 0 : index
    %62 = vector.load %arg1[%61, %c0_43, %c0_44] : memref<50x1x32xbf16, #tpu.memory_space<vmem>>, vector<1x1x32xbf16>
    %63 = vector.shape_cast %62 : vector<1x1x32xbf16> to vector<1x32xbf16>
    %64 = arith.extf %63 : vector<1x32xbf16> to vector<1x32xf32>
    %c1_45 = arith.constant 1 : index
    %c6_46 = arith.constant 6 : index
    %65 = memref.load %arg0[%c1_45, %c6_46] : memref<2x8xi32, #tpu.memory_space<smem>>
    %66 = arith.index_cast %65 : i32 to index
    %c0_47 = arith.constant 0 : index
    %c0_48 = arith.constant 0 : index
    %67 = vector.load %arg1[%66, %c0_47, %c0_48] : memref<50x1x32xbf16, #tpu.memory_space<vmem>>, vector<1x1x32xbf16>
    %68 = vector.shape_cast %67 : vector<1x1x32xbf16> to vector<1x32xbf16>
    %69 = arith.extf %68 : vector<1x32xbf16> to vector<1x32xf32>
    %c0_49 = arith.constant 0 : index
    %c7 = arith.constant 7 : index
    %70 = memref.load %arg0[%c0_49, %c7] : memref<2x8xi32, #tpu.memory_space<smem>>
    %71 = arith.index_cast %70 : i32 to index
    %c0_50 = arith.constant 0 : index
    %c0_51 = arith.constant 0 : index
    %72 = vector.load %arg1[%71, %c0_50, %c0_51] : memref<50x1x32xbf16, #tpu.memory_space<vmem>>, vector<1x1x32xbf16>
    %73 = vector.shape_cast %72 : vector<1x1x32xbf16> to vector<1x32xbf16>
    %74 = arith.extf %73 : vector<1x32xbf16> to vector<1x32xf32>
    %c1_52 = arith.constant 1 : index
    %c7_53 = arith.constant 7 : index
    %75 = memref.load %arg0[%c1_52, %c7_53] : memref<2x8xi32, #tpu.memory_space<smem>>
    %76 = arith.index_cast %75 : i32 to index
    %c0_54 = arith.constant 0 : index
    %c0_55 = arith.constant 0 : index
    %77 = vector.load %arg1[%76, %c0_54, %c0_55] : memref<50x1x32xbf16, #tpu.memory_space<vmem>>, vector<1x1x32xbf16>
    %78 = vector.shape_cast %77 : vector<1x1x32xbf16> to vector<1x32xbf16>
    %79 = arith.extf %78 : vector<1x32xbf16> to vector<1x32xf32>
    %80 = tpu.concatenate %4, %9, %14, %19, %24, %29, %34, %39, %44, %49, %54, %59, %64, %69, %74, %79 in 0 : vector<1x32xf32>, vector<1x32xf32>, vector<1x32xf32>, vector<1x32xf32>, vector<1x32xf32>, vector<1x32xf32>, vector<1x32xf32>, vector<1x32xf32>, vector<1x32xf32>, vector<1x32xf32>, vector<1x32xf32>, vector<1x32xf32>, vector<1x32xf32>, vector<1x32xf32>, vector<1x32xf32>, vector<1x32xf32> -> vector<16x32xf32>
    %81 = arith.truncf %80 : vector<16x32xf32> to vector<16x32xbf16>
    %c0_56 = arith.constant 0 : index
    %c0_57 = arith.constant 0 : index
    %82 = vector.load %arg2[%c0_56, %c0_57] : memref<32x256xbf16, #tpu.memory_space<vmem>>, vector<32x256xbf16>
    %cst = arith.constant dense<0.000000e+00> : vector<16x256xf32>
    %83 = tpu.matmul %81, %82, %cst {dimension_numbers = #tpu.dot_dimension_numbers<[1], [0], [0], [1], [0, 0, 1, 1], [], []>} : vector<16x32xbf16>, vector<32x256xbf16>, vector<16x256xf32> -> vector<16x256xf32>
    %c0_58 = arith.constant 0 : index
    %c0_59 = arith.constant 0 : index
    %84 = vector.load %arg3[%c0_58, %c0_59] : memref<1x256xf32, #tpu.memory_space<vmem>>, vector<1x256xf32>
    %85 = vector.broadcast %84 : vector<1x256xf32> to vector<16x256xf32>
    %86 = arith.addf %83, %85 : vector<16x256xf32>
    %cst_60 = arith.constant 0.000000e+00 : f32
    %87 = vector.broadcast %cst_60 : f32 to vector<4x64xf32>
    %c0_61 = arith.constant 0 : index
    %c0_62 = arith.constant 0 : index
    %88 = vector.load %arg14[%c0_61, %c0_62] : memref<4x64xf32, #tpu.memory_space<vmem>>, vector<4x64xf32>
    tpu.vector_store %arg14[%c0_61, %c0_62], %87 {strides = array<i32>} : memref<4x64xf32, #tpu.memory_space<vmem>>, vector<4x64xf32>,
    %cst_63 = arith.constant 0.000000e+00 : f32
    %89 = vector.broadcast %cst_63 : f32 to vector<4x32xf32>
    %c0_64 = arith.constant 0 : index
    %c0_65 = arith.constant 0 : index
    %90 = vector.load %arg4[%c0_64, %c0_65] : memref<64x128xbf16, #tpu.memory_space<vmem>>, vector<64x128xbf16>
    %91 = tpu.iota {dimensions = array<i32: 1>} : vector<4x128xi32>
    %c64_i32 = arith.constant 64 : i32
    %92 = vector.broadcast %c64_i32 : i32 to vector<4x128xi32>
    %93 = arith.cmpi sge, %91, %92 : vector<4x128xi32>
    %c96_i32 = arith.constant 96 : i32
    %94 = vector.broadcast %c96_i32 : i32 to vector<4x128xi32>
    %95 = arith.cmpi slt, %91, %94 : vector<4x128xi32>
    %96 = arith.andi %93, %95 : vector<4x128xi1>
    %97 = vector.extract_strided_slice %86 {offsets = [0, 0], sizes = [2, 128], strides = [1, 1]} : vector<16x256xf32> to vector<2x128xf32>
    %98 = vector.extract_strided_slice %86 {offsets = [14, 128], sizes = [2, 128], strides = [1, 1]} : vector<16x256xf32> to vector<2x128xf32>
    %c0_66 = arith.constant 0 : index
    %c0_67 = arith.constant 0 : index
    %99 = vector.load %arg14[%c0_66, %c0_67] : memref<4x64xf32, #tpu.memory_space<vmem>>, vector<4x64xf32>
    %100 = arith.truncf %99 : vector<4x64xf32> to vector<4x64xbf16>
    %cst_68 = arith.constant dense<0.000000e+00> : vector<4x128xf32>
    %101 = tpu.matmul %100, %90, %cst_68 {dimension_numbers = #tpu.dot_dimension_numbers<[1], [0], [0], [1], [0, 0, 1, 1], [], []>} : vector<4x64xbf16>, vector<64x128xbf16>, vector<4x128xf32> -> vector<4x128xf32>
    %102 = tpu.concatenate %97, %98 in 0 : vector<2x128xf32>, vector<2x128xf32> -> vector<4x128xf32>
    %103 = arith.addf %102, %101 : vector<4x128xf32>
    %cst_69 = arith.constant 2.000000e+00 : f32
    %104 = vector.broadcast %cst_69 : f32 to vector<4x128xf32>
    %105 = arith.mulf %104, %103 : vector<4x128xf32>
    %106 = arith.select %96, %105, %103 : vector<4x128xi1>, vector<4x128xf32>
    %107 = arith.negf %106 : vector<4x128xf32>
    %108 = math.exp %107 : vector<4x128xf32>
    %cst_70 = arith.constant 1.000000e+00 : f32
    %109 = vector.broadcast %cst_70 : f32 to vector<4x128xf32>
    %110 = arith.addf %109, %108 : vector<4x128xf32>
    %111 = arith.divf %109, %110 : vector<4x128xf32>
    %cst_71 = arith.constant 2.000000e+00 : f32
    %112 = vector.broadcast %cst_71 : f32 to vector<4x128xf32>
    %113 = arith.mulf %112, %111 : vector<4x128xf32>
    %cst_72 = arith.constant 1.000000e+00 : f32
    %114 = vector.broadcast %cst_72 : f32 to vector<4x128xf32>
    %115 = arith.subf %113, %114 : vector<4x128xf32>
    %116 = arith.select %96, %115, %111 : vector<4x128xi1>, vector<4x128xf32>
    %117 = vector.extract_strided_slice %116 {offsets = [0, 0], sizes = [4, 32], strides = [1, 1]} : vector<4x128xf32> to vector<4x32xf32>
    %118 = vector.extract_strided_slice %116 {offsets = [0, 32], sizes = [4, 32], strides = [1, 1]} : vector<4x128xf32> to vector<4x32xf32>
    %119 = vector.extract_strided_slice %116 {offsets = [0, 64], sizes = [4, 32], strides = [1, 1]} : vector<4x128xf32> to vector<4x32xf32>
    %120 = vector.extract_strided_slice %116 {offsets = [0, 96], sizes = [4, 32], strides = [1, 1]} : vector<4x128xf32> to vector<4x32xf32>
    %121 = arith.mulf %118, %89 : vector<4x32xf32>
    %122 = arith.mulf %117, %119 : vector<4x32xf32>
    %123 = arith.addf %121, %122 : vector<4x32xf32>
    %124 = math.tanh %123 : vector<4x32xf32>
    %125 = arith.mulf %120, %124 : vector<4x32xf32>
    %126 = vector.extract_strided_slice %125 {offsets = [0, 0], sizes = [2, 32], strides = [1, 1]} : vector<4x32xf32> to vector<2x32xf32>
    %c0_73 = arith.constant 0 : index
    %c0_74 = arith.constant 0 : index
    %127 = vector.load %arg14[%c0_73, %c0_74] : memref<4x64xf32, #tpu.memory_space<vmem>>, vector<2x32xf32>
    tpu.vector_store %arg14[%c0_73, %c0_74], %126 {strides = array<i32>} : memref<4x64xf32, #tpu.memory_space<vmem>>, vector<2x32xf32>,
    %128 = vector.extract_strided_slice %125 {offsets = [2, 0], sizes = [2, 32], strides = [1, 1]} : vector<4x32xf32> to vector<2x32xf32>
    %c2_75 = arith.constant 2 : index
    %c32 = arith.constant 32 : index
    %129 = vector.load %arg14[%c2_75, %c32] : memref<4x64xf32, #tpu.memory_space<vmem>>, vector<2x32xf32>
    tpu.vector_store %arg14[%c2_75, %c32], %128 {strides = array<i32>} : memref<4x64xf32, #tpu.memory_space<vmem>>, vector<2x32xf32>,
    %130 = vector.extract_strided_slice %125 {offsets = [0, 0], sizes = [2, 32], strides = [1, 1]} : vector<4x32xf32> to vector<2x32xf32>
    %131 = vector.extract_strided_slice %125 {offsets = [2, 0], sizes = [2, 32], strides = [1, 1]} : vector<4x32xf32> to vector<2x32xf32>
    %132 = vector.extract_strided_slice %86 {offsets = [2, 0], sizes = [2, 128], strides = [1, 1]} : vector<16x256xf32> to vector<2x128xf32>
    %133 = vector.extract_strided_slice %86 {offsets = [12, 128], sizes = [2, 128], strides = [1, 1]} : vector<16x256xf32> to vector<2x128xf32>
    %c0_76 = arith.constant 0 : index
    %c0_77 = arith.constant 0 : index
    %134 = vector.load %arg14[%c0_76, %c0_77] : memref<4x64xf32, #tpu.memory_space<vmem>>, vector<4x64xf32>
    %135 = arith.truncf %134 : vector<4x64xf32> to vector<4x64xbf16>
    %cst_78 = arith.constant dense<0.000000e+00> : vector<4x128xf32>
    %136 = tpu.matmul %135, %90, %cst_78 {dimension_numbers = #tpu.dot_dimension_numbers<[1], [0], [0], [1], [0, 0, 1, 1], [], []>} : vector<4x64xbf16>, vector<64x128xbf16>, vector<4x128xf32> -> vector<4x128xf32>
    %137 = tpu.concatenate %132, %133 in 0 : vector<2x128xf32>, vector<2x128xf32> -> vector<4x128xf32>
    %138 = arith.addf %137, %136 : vector<4x128xf32>
    %cst_79 = arith.constant 2.000000e+00 : f32
    %139 = vector.broadcast %cst_79 : f32 to vector<4x128xf32>
    %140 = arith.mulf %139, %138 : vector<4x128xf32>
    %141 = arith.select %96, %140, %138 : vector<4x128xi1>, vector<4x128xf32>
    %142 = arith.negf %141 : vector<4x128xf32>
    %143 = math.exp %142 : vector<4x128xf32>
    %cst_80 = arith.constant 1.000000e+00 : f32
    %144 = vector.broadcast %cst_80 : f32 to vector<4x128xf32>
    %145 = arith.addf %144, %143 : vector<4x128xf32>
    %146 = arith.divf %144, %145 : vector<4x128xf32>
    %cst_81 = arith.constant 2.000000e+00 : f32
    %147 = vector.broadcast %cst_81 : f32 to vector<4x128xf32>
    %148 = arith.mulf %147, %146 : vector<4x128xf32>
    %cst_82 = arith.constant 1.000000e+00 : f32
    %149 = vector.broadcast %cst_82 : f32 to vector<4x128xf32>
    %150 = arith.subf %148, %149 : vector<4x128xf32>
    %151 = arith.select %96, %150, %146 : vector<4x128xi1>, vector<4x128xf32>
    %152 = vector.extract_strided_slice %151 {offsets = [0, 0], sizes = [4, 32], strides = [1, 1]} : vector<4x128xf32> to vector<4x32xf32>
    %153 = vector.extract_strided_slice %151 {offsets = [0, 32], sizes = [4, 32], strides = [1, 1]} : vector<4x128xf32> to vector<4x32xf32>
    %154 = vector.extract_strided_slice %151 {offsets = [0, 64], sizes = [4, 32], strides = [1, 1]} : vector<4x128xf32> to vector<4x32xf32>
    %155 = vector.extract_strided_slice %151 {offsets = [0, 96], sizes = [4, 32], strides = [1, 1]} : vector<4x128xf32> to vector<4x32xf32>
    %156 = arith.mulf %153, %123 : vector<4x32xf32>
    %157 = arith.mulf %152, %154 : vector<4x32xf32>
    %158 = arith.addf %156, %157 : vector<4x32xf32>
    %159 = math.tanh %158 : vector<4x32xf32>
    %160 = arith.mulf %155, %159 : vector<4x32xf32>
    %161 = vector.extract_strided_slice %160 {offsets = [0, 0], sizes = [2, 32], strides = [1, 1]} : vector<4x32xf32> to vector<2x32xf32>
    %c0_83 = arith.constant 0 : index
    %c0_84 = arith.constant 0 : index
    %162 = vector.load %arg14[%c0_83, %c0_84] : memref<4x64xf32, #tpu.memory_space<vmem>>, vector<2x32xf32>
    tpu.vector_store %arg14[%c0_83, %c0_84], %161 {strides = array<i32>} : memref<4x64xf32, #tpu.memory_space<vmem>>, vector<2x32xf32>,
    %163 = vector.extract_strided_slice %160 {offsets = [2, 0], sizes = [2, 32], strides = [1, 1]} : vector<4x32xf32> to vector<2x32xf32>
    %c2_85 = arith.constant 2 : index
    %c32_86 = arith.constant 32 : index
    %164 = vector.load %arg14[%c2_85, %c32_86] : memref<4x64xf32, #tpu.memory_space<vmem>>, vector<2x32xf32>
    tpu.vector_store %arg14[%c2_85, %c32_86], %163 {strides = array<i32>} : memref<4x64xf32, #tpu.memory_space<vmem>>, vector<2x32xf32>,
    %165 = vector.extract_strided_slice %160 {offsets = [0, 0], sizes = [2, 32], strides = [1, 1]} : vector<4x32xf32> to vector<2x32xf32>
    %166 = vector.extract_strided_slice %160 {offsets = [2, 0], sizes = [2, 32], strides = [1, 1]} : vector<4x32xf32> to vector<2x32xf32>
    %167 = vector.extract_strided_slice %86 {offsets = [4, 0], sizes = [2, 128], strides = [1, 1]} : vector<16x256xf32> to vector<2x128xf32>
    %168 = vector.extract_strided_slice %86 {offsets = [10, 128], sizes = [2, 128], strides = [1, 1]} : vector<16x256xf32> to vector<2x128xf32>
    %c0_87 = arith.constant 0 : index
    %c0_88 = arith.constant 0 : index
    %169 = vector.load %arg14[%c0_87, %c0_88] : memref<4x64xf32, #tpu.memory_space<vmem>>, vector<4x64xf32>
    %170 = arith.truncf %169 : vector<4x64xf32> to vector<4x64xbf16>
    %cst_89 = arith.constant dense<0.000000e+00> : vector<4x128xf32>
    %171 = tpu.matmul %170, %90, %cst_89 {dimension_numbers = #tpu.dot_dimension_numbers<[1], [0], [0], [1], [0, 0, 1, 1], [], []>} : vector<4x64xbf16>, vector<64x128xbf16>, vector<4x128xf32> -> vector<4x128xf32>
    %172 = tpu.concatenate %167, %168 in 0 : vector<2x128xf32>, vector<2x128xf32> -> vector<4x128xf32>
    %173 = arith.addf %172, %171 : vector<4x128xf32>
    %cst_90 = arith.constant 2.000000e+00 : f32
    %174 = vector.broadcast %cst_90 : f32 to vector<4x128xf32>
    %175 = arith.mulf %174, %173 : vector<4x128xf32>
    %176 = arith.select %96, %175, %173 : vector<4x128xi1>, vector<4x128xf32>
    %177 = arith.negf %176 : vector<4x128xf32>
    %178 = math.exp %177 : vector<4x128xf32>
    %cst_91 = arith.constant 1.000000e+00 : f32
    %179 = vector.broadcast %cst_91 : f32 to vector<4x128xf32>
    %180 = arith.addf %179, %178 : vector<4x128xf32>
    %181 = arith.divf %179, %180 : vector<4x128xf32>
    %cst_92 = arith.constant 2.000000e+00 : f32
    %182 = vector.broadcast %cst_92 : f32 to vector<4x128xf32>
    %183 = arith.mulf %182, %181 : vector<4x128xf32>
    %cst_93 = arith.constant 1.000000e+00 : f32
    %184 = vector.broadcast %cst_93 : f32 to vector<4x128xf32>
    %185 = arith.subf %183, %184 : vector<4x128xf32>
    %186 = arith.select %96, %185, %181 : vector<4x128xi1>, vector<4x128xf32>
    %187 = vector.extract_strided_slice %186 {offsets = [0, 0], sizes = [4, 32], strides = [1, 1]} : vector<4x128xf32> to vector<4x32xf32>
    %188 = vector.extract_strided_slice %186 {offsets = [0, 32], sizes = [4, 32], strides = [1, 1]} : vector<4x128xf32> to vector<4x32xf32>
    %189 = vector.extract_strided_slice %186 {offsets = [0, 64], sizes = [4, 32], strides = [1, 1]} : vector<4x128xf32> to vector<4x32xf32>
    %190 = vector.extract_strided_slice %186 {offsets = [0, 96], sizes = [4, 32], strides = [1, 1]} : vector<4x128xf32> to vector<4x32xf32>
    %191 = arith.mulf %188, %158 : vector<4x32xf32>
    %192 = arith.mulf %187, %189 : vector<4x32xf32>
    %193 = arith.addf %191, %192 : vector<4x32xf32>
    %194 = math.tanh %193 : vector<4x32xf32>
    %195 = arith.mulf %190, %194 : vector<4x32xf32>
    %196 = vector.extract_strided_slice %195 {offsets = [0, 0], sizes = [2, 32], strides = [1, 1]} : vector<4x32xf32> to vector<2x32xf32>
    %c0_94 = arith.constant 0 : index
    %c0_95 = arith.constant 0 : index
    %197 = vector.load %arg14[%c0_94, %c0_95] : memref<4x64xf32, #tpu.memory_space<vmem>>, vector<2x32xf32>
    tpu.vector_store %arg14[%c0_94, %c0_95], %196 {strides = array<i32>} : memref<4x64xf32, #tpu.memory_space<vmem>>, vector<2x32xf32>,
    %198 = vector.extract_strided_slice %195 {offsets = [2, 0], sizes = [2, 32], strides = [1, 1]} : vector<4x32xf32> to vector<2x32xf32>
    %c2_96 = arith.constant 2 : index
    %c32_97 = arith.constant 32 : index
    %199 = vector.load %arg14[%c2_96, %c32_97] : memref<4x64xf32, #tpu.memory_space<vmem>>, vector<2x32xf32>
    tpu.vector_store %arg14[%c2_96, %c32_97], %198 {strides = array<i32>} : memref<4x64xf32, #tpu.memory_space<vmem>>, vector<2x32xf32>,
    %200 = vector.extract_strided_slice %195 {offsets = [0, 0], sizes = [2, 32], strides = [1, 1]} : vector<4x32xf32> to vector<2x32xf32>
    %201 = vector.extract_strided_slice %195 {offsets = [2, 0], sizes = [2, 32], strides = [1, 1]} : vector<4x32xf32> to vector<2x32xf32>
    %202 = vector.extract_strided_slice %86 {offsets = [6, 0], sizes = [2, 128], strides = [1, 1]} : vector<16x256xf32> to vector<2x128xf32>
    %203 = vector.extract_strided_slice %86 {offsets = [8, 128], sizes = [2, 128], strides = [1, 1]} : vector<16x256xf32> to vector<2x128xf32>
    %c0_98 = arith.constant 0 : index
    %c0_99 = arith.constant 0 : index
    %204 = vector.load %arg14[%c0_98, %c0_99] : memref<4x64xf32, #tpu.memory_space<vmem>>, vector<4x64xf32>
    %205 = arith.truncf %204 : vector<4x64xf32> to vector<4x64xbf16>
    %cst_100 = arith.constant dense<0.000000e+00> : vector<4x128xf32>
    %206 = tpu.matmul %205, %90, %cst_100 {dimension_numbers = #tpu.dot_dimension_numbers<[1], [0], [0], [1], [0, 0, 1, 1], [], []>} : vector<4x64xbf16>, vector<64x128xbf16>, vector<4x128xf32> -> vector<4x128xf32>
    %207 = tpu.concatenate %202, %203 in 0 : vector<2x128xf32>, vector<2x128xf32> -> vector<4x128xf32>
    %208 = arith.addf %207, %206 : vector<4x128xf32>
    %cst_101 = arith.constant 2.000000e+00 : f32
    %209 = vector.broadcast %cst_101 : f32 to vector<4x128xf32>
    %210 = arith.mulf %209, %208 : vector<4x128xf32>
    %211 = arith.select %96, %210, %208 : vector<4x128xi1>, vector<4x128xf32>
    %212 = arith.negf %211 : vector<4x128xf32>
    %213 = math.exp %212 : vector<4x128xf32>
    %cst_102 = arith.constant 1.000000e+00 : f32
    %214 = vector.broadcast %cst_102 : f32 to vector<4x128xf32>
    %215 = arith.addf %214, %213 : vector<4x128xf32>
    %216 = arith.divf %214, %215 : vector<4x128xf32>
    %cst_103 = arith.constant 2.000000e+00 : f32
    %217 = vector.broadcast %cst_103 : f32 to vector<4x128xf32>
    %218 = arith.mulf %217, %216 : vector<4x128xf32>
    %cst_104 = arith.constant 1.000000e+00 : f32
    %219 = vector.broadcast %cst_104 : f32 to vector<4x128xf32>
    %220 = arith.subf %218, %219 : vector<4x128xf32>
    %221 = arith.select %96, %220, %216 : vector<4x128xi1>, vector<4x128xf32>
    %222 = vector.extract_strided_slice %221 {offsets = [0, 0], sizes = [4, 32], strides = [1, 1]} : vector<4x128xf32> to vector<4x32xf32>
    %223 = vector.extract_strided_slice %221 {offsets = [0, 32], sizes = [4, 32], strides = [1, 1]} : vector<4x128xf32> to vector<4x32xf32>
    %224 = vector.extract_strided_slice %221 {offsets = [0, 64], sizes = [4, 32], strides = [1, 1]} : vector<4x128xf32> to vector<4x32xf32>
    %225 = vector.extract_strided_slice %221 {offsets = [0, 96], sizes = [4, 32], strides = [1, 1]} : vector<4x128xf32> to vector<4x32xf32>
    %226 = arith.mulf %223, %193 : vector<4x32xf32>
    %227 = arith.mulf %222, %224 : vector<4x32xf32>
    %228 = arith.addf %226, %227 : vector<4x32xf32>
    %229 = math.tanh %228 : vector<4x32xf32>
    %230 = arith.mulf %225, %229 : vector<4x32xf32>
    %231 = vector.extract_strided_slice %230 {offsets = [0, 0], sizes = [2, 32], strides = [1, 1]} : vector<4x32xf32> to vector<2x32xf32>
    %c0_105 = arith.constant 0 : index
    %c0_106 = arith.constant 0 : index
    %232 = vector.load %arg14[%c0_105, %c0_106] : memref<4x64xf32, #tpu.memory_space<vmem>>, vector<2x32xf32>
    tpu.vector_store %arg14[%c0_105, %c0_106], %231 {strides = array<i32>} : memref<4x64xf32, #tpu.memory_space<vmem>>, vector<2x32xf32>,
    %233 = vector.extract_strided_slice %230 {offsets = [2, 0], sizes = [2, 32], strides = [1, 1]} : vector<4x32xf32> to vector<2x32xf32>
    %c2_107 = arith.constant 2 : index
    %c32_108 = arith.constant 32 : index
    %234 = vector.load %arg14[%c2_107, %c32_108] : memref<4x64xf32, #tpu.memory_space<vmem>>, vector<2x32xf32>
    tpu.vector_store %arg14[%c2_107, %c32_108], %233 {strides = array<i32>} : memref<4x64xf32, #tpu.memory_space<vmem>>, vector<2x32xf32>,
    %235 = vector.extract_strided_slice %230 {offsets = [0, 0], sizes = [2, 32], strides = [1, 1]} : vector<4x32xf32> to vector<2x32xf32>
    %236 = vector.extract_strided_slice %230 {offsets = [2, 0], sizes = [2, 32], strides = [1, 1]} : vector<4x32xf32> to vector<2x32xf32>
    %237 = vector.extract_strided_slice %86 {offsets = [8, 0], sizes = [2, 128], strides = [1, 1]} : vector<16x256xf32> to vector<2x128xf32>
    %238 = vector.extract_strided_slice %86 {offsets = [6, 128], sizes = [2, 128], strides = [1, 1]} : vector<16x256xf32> to vector<2x128xf32>
    %c0_109 = arith.constant 0 : index
    %c0_110 = arith.constant 0 : index
    %239 = vector.load %arg14[%c0_109, %c0_110] : memref<4x64xf32, #tpu.memory_space<vmem>>, vector<4x64xf32>
    %240 = arith.truncf %239 : vector<4x64xf32> to vector<4x64xbf16>
    %cst_111 = arith.constant dense<0.000000e+00> : vector<4x128xf32>
    %241 = tpu.matmul %240, %90, %cst_111 {dimension_numbers = #tpu.dot_dimension_numbers<[1], [0], [0], [1], [0, 0, 1, 1], [], []>} : vector<4x64xbf16>, vector<64x128xbf16>, vector<4x128xf32> -> vector<4x128xf32>
    %242 = tpu.concatenate %237, %238 in 0 : vector<2x128xf32>, vector<2x128xf32> -> vector<4x128xf32>
    %243 = arith.addf %242, %241 : vector<4x128xf32>
    %cst_112 = arith.constant 2.000000e+00 : f32
    %244 = vector.broadcast %cst_112 : f32 to vector<4x128xf32>
    %245 = arith.mulf %244, %243 : vector<4x128xf32>
    %246 = arith.select %96, %245, %243 : vector<4x128xi1>, vector<4x128xf32>
    %247 = arith.negf %246 : vector<4x128xf32>
    %248 = math.exp %247 : vector<4x128xf32>
    %cst_113 = arith.constant 1.000000e+00 : f32
    %249 = vector.broadcast %cst_113 : f32 to vector<4x128xf32>
    %250 = arith.addf %249, %248 : vector<4x128xf32>
    %251 = arith.divf %249, %250 : vector<4x128xf32>
    %cst_114 = arith.constant 2.000000e+00 : f32
    %252 = vector.broadcast %cst_114 : f32 to vector<4x128xf32>
    %253 = arith.mulf %252, %251 : vector<4x128xf32>
    %cst_115 = arith.constant 1.000000e+00 : f32
    %254 = vector.broadcast %cst_115 : f32 to vector<4x128xf32>
    %255 = arith.subf %253, %254 : vector<4x128xf32>
    %256 = arith.select %96, %255, %251 : vector<4x128xi1>, vector<4x128xf32>
    %257 = vector.extract_strided_slice %256 {offsets = [0, 0], sizes = [4, 32], strides = [1, 1]} : vector<4x128xf32> to vector<4x32xf32>
    %258 = vector.extract_strided_slice %256 {offsets = [0, 32], sizes = [4, 32], strides = [1, 1]} : vector<4x128xf32> to vector<4x32xf32>
    %259 = vector.extract_strided_slice %256 {offsets = [0, 64], sizes = [4, 32], strides = [1, 1]} : vector<4x128xf32> to vector<4x32xf32>
    %260 = vector.extract_strided_slice %256 {offsets = [0, 96], sizes = [4, 32], strides = [1, 1]} : vector<4x128xf32> to vector<4x32xf32>
    %261 = arith.mulf %258, %228 : vector<4x32xf32>
    %262 = arith.mulf %257, %259 : vector<4x32xf32>
    %263 = arith.addf %261, %262 : vector<4x32xf32>
    %264 = math.tanh %263 : vector<4x32xf32>
    %265 = arith.mulf %260, %264 : vector<4x32xf32>
    %266 = vector.extract_strided_slice %265 {offsets = [0, 0], sizes = [2, 32], strides = [1, 1]} : vector<4x32xf32> to vector<2x32xf32>
    %c0_116 = arith.constant 0 : index
    %c0_117 = arith.constant 0 : index
    %267 = vector.load %arg14[%c0_116, %c0_117] : memref<4x64xf32, #tpu.memory_space<vmem>>, vector<2x32xf32>
    tpu.vector_store %arg14[%c0_116, %c0_117], %266 {strides = array<i32>} : memref<4x64xf32, #tpu.memory_space<vmem>>, vector<2x32xf32>,
    %268 = vector.extract_strided_slice %265 {offsets = [2, 0], sizes = [2, 32], strides = [1, 1]} : vector<4x32xf32> to vector<2x32xf32>
    %c2_118 = arith.constant 2 : index
    %c32_119 = arith.constant 32 : index
    %269 = vector.load %arg14[%c2_118, %c32_119] : memref<4x64xf32, #tpu.memory_space<vmem>>, vector<2x32xf32>
    tpu.vector_store %arg14[%c2_118, %c32_119], %268 {strides = array<i32>} : memref<4x64xf32, #tpu.memory_space<vmem>>, vector<2x32xf32>,
    %270 = vector.extract_strided_slice %265 {offsets = [0, 0], sizes = [2, 32], strides = [1, 1]} : vector<4x32xf32> to vector<2x32xf32>
    %271 = vector.extract_strided_slice %265 {offsets = [2, 0], sizes = [2, 32], strides = [1, 1]} : vector<4x32xf32> to vector<2x32xf32>
    %272 = vector.extract_strided_slice %86 {offsets = [10, 0], sizes = [2, 128], strides = [1, 1]} : vector<16x256xf32> to vector<2x128xf32>
    %273 = vector.extract_strided_slice %86 {offsets = [4, 128], sizes = [2, 128], strides = [1, 1]} : vector<16x256xf32> to vector<2x128xf32>
    %c0_120 = arith.constant 0 : index
    %c0_121 = arith.constant 0 : index
    %274 = vector.load %arg14[%c0_120, %c0_121] : memref<4x64xf32, #tpu.memory_space<vmem>>, vector<4x64xf32>
    %275 = arith.truncf %274 : vector<4x64xf32> to vector<4x64xbf16>
    %cst_122 = arith.constant dense<0.000000e+00> : vector<4x128xf32>
    %276 = tpu.matmul %275, %90, %cst_122 {dimension_numbers = #tpu.dot_dimension_numbers<[1], [0], [0], [1], [0, 0, 1, 1], [], []>} : vector<4x64xbf16>, vector<64x128xbf16>, vector<4x128xf32> -> vector<4x128xf32>
    %277 = tpu.concatenate %272, %273 in 0 : vector<2x128xf32>, vector<2x128xf32> -> vector<4x128xf32>
    %278 = arith.addf %277, %276 : vector<4x128xf32>
    %cst_123 = arith.constant 2.000000e+00 : f32
    %279 = vector.broadcast %cst_123 : f32 to vector<4x128xf32>
    %280 = arith.mulf %279, %278 : vector<4x128xf32>
    %281 = arith.select %96, %280, %278 : vector<4x128xi1>, vector<4x128xf32>
    %282 = arith.negf %281 : vector<4x128xf32>
    %283 = math.exp %282 : vector<4x128xf32>
    %cst_124 = arith.constant 1.000000e+00 : f32
    %284 = vector.broadcast %cst_124 : f32 to vector<4x128xf32>
    %285 = arith.addf %284, %283 : vector<4x128xf32>
    %286 = arith.divf %284, %285 : vector<4x128xf32>
    %cst_125 = arith.constant 2.000000e+00 : f32
    %287 = vector.broadcast %cst_125 : f32 to vector<4x128xf32>
    %288 = arith.mulf %287, %286 : vector<4x128xf32>
    %cst_126 = arith.constant 1.000000e+00 : f32
    %289 = vector.broadcast %cst_126 : f32 to vector<4x128xf32>
    %290 = arith.subf %288, %289 : vector<4x128xf32>
    %291 = arith.select %96, %290, %286 : vector<4x128xi1>, vector<4x128xf32>
    %292 = vector.extract_strided_slice %291 {offsets = [0, 0], sizes = [4, 32], strides = [1, 1]} : vector<4x128xf32> to vector<4x32xf32>
    %293 = vector.extract_strided_slice %291 {offsets = [0, 32], sizes = [4, 32], strides = [1, 1]} : vector<4x128xf32> to vector<4x32xf32>
    %294 = vector.extract_strided_slice %291 {offsets = [0, 64], sizes = [4, 32], strides = [1, 1]} : vector<4x128xf32> to vector<4x32xf32>
    %295 = vector.extract_strided_slice %291 {offsets = [0, 96], sizes = [4, 32], strides = [1, 1]} : vector<4x128xf32> to vector<4x32xf32>
    %296 = arith.mulf %293, %263 : vector<4x32xf32>
    %297 = arith.mulf %292, %294 : vector<4x32xf32>
    %298 = arith.addf %296, %297 : vector<4x32xf32>
    %299 = math.tanh %298 : vector<4x32xf32>
    %300 = arith.mulf %295, %299 : vector<4x32xf32>
    %301 = vector.extract_strided_slice %300 {offsets = [0, 0], sizes = [2, 32], strides = [1, 1]} : vector<4x32xf32> to vector<2x32xf32>
    %c0_127 = arith.constant 0 : index
    %c0_128 = arith.constant 0 : index
    %302 = vector.load %arg14[%c0_127, %c0_128] : memref<4x64xf32, #tpu.memory_space<vmem>>, vector<2x32xf32>
    tpu.vector_store %arg14[%c0_127, %c0_128], %301 {strides = array<i32>} : memref<4x64xf32, #tpu.memory_space<vmem>>, vector<2x32xf32>,
    %303 = vector.extract_strided_slice %300 {offsets = [2, 0], sizes = [2, 32], strides = [1, 1]} : vector<4x32xf32> to vector<2x32xf32>
    %c2_129 = arith.constant 2 : index
    %c32_130 = arith.constant 32 : index
    %304 = vector.load %arg14[%c2_129, %c32_130] : memref<4x64xf32, #tpu.memory_space<vmem>>, vector<2x32xf32>
    tpu.vector_store %arg14[%c2_129, %c32_130], %303 {strides = array<i32>} : memref<4x64xf32, #tpu.memory_space<vmem>>, vector<2x32xf32>,
    %305 = vector.extract_strided_slice %300 {offsets = [0, 0], sizes = [2, 32], strides = [1, 1]} : vector<4x32xf32> to vector<2x32xf32>
    %306 = vector.extract_strided_slice %300 {offsets = [2, 0], sizes = [2, 32], strides = [1, 1]} : vector<4x32xf32> to vector<2x32xf32>
    %307 = vector.extract_strided_slice %86 {offsets = [12, 0], sizes = [2, 128], strides = [1, 1]} : vector<16x256xf32> to vector<2x128xf32>
    %308 = vector.extract_strided_slice %86 {offsets = [2, 128], sizes = [2, 128], strides = [1, 1]} : vector<16x256xf32> to vector<2x128xf32>
    %c0_131 = arith.constant 0 : index
    %c0_132 = arith.constant 0 : index
    %309 = vector.load %arg14[%c0_131, %c0_132] : memref<4x64xf32, #tpu.memory_space<vmem>>, vector<4x64xf32>
    %310 = arith.truncf %309 : vector<4x64xf32> to vector<4x64xbf16>
    %cst_133 = arith.constant dense<0.000000e+00> : vector<4x128xf32>
    %311 = tpu.matmul %310, %90, %cst_133 {dimension_numbers = #tpu.dot_dimension_numbers<[1], [0], [0], [1], [0, 0, 1, 1], [], []>} : vector<4x64xbf16>, vector<64x128xbf16>, vector<4x128xf32> -> vector<4x128xf32>
    %312 = tpu.concatenate %307, %308 in 0 : vector<2x128xf32>, vector<2x128xf32> -> vector<4x128xf32>
    %313 = arith.addf %312, %311 : vector<4x128xf32>
    %cst_134 = arith.constant 2.000000e+00 : f32
    %314 = vector.broadcast %cst_134 : f32 to vector<4x128xf32>
    %315 = arith.mulf %314, %313 : vector<4x128xf32>
    %316 = arith.select %96, %315, %313 : vector<4x128xi1>, vector<4x128xf32>
    %317 = arith.negf %316 : vector<4x128xf32>
    %318 = math.exp %317 : vector<4x128xf32>
    %cst_135 = arith.constant 1.000000e+00 : f32
    %319 = vector.broadcast %cst_135 : f32 to vector<4x128xf32>
    %320 = arith.addf %319, %318 : vector<4x128xf32>
    %321 = arith.divf %319, %320 : vector<4x128xf32>
    %cst_136 = arith.constant 2.000000e+00 : f32
    %322 = vector.broadcast %cst_136 : f32 to vector<4x128xf32>
    %323 = arith.mulf %322, %321 : vector<4x128xf32>
    %cst_137 = arith.constant 1.000000e+00 : f32
    %324 = vector.broadcast %cst_137 : f32 to vector<4x128xf32>
    %325 = arith.subf %323, %324 : vector<4x128xf32>
    %326 = arith.select %96, %325, %321 : vector<4x128xi1>, vector<4x128xf32>
    %327 = vector.extract_strided_slice %326 {offsets = [0, 0], sizes = [4, 32], strides = [1, 1]} : vector<4x128xf32> to vector<4x32xf32>
    %328 = vector.extract_strided_slice %326 {offsets = [0, 32], sizes = [4, 32], strides = [1, 1]} : vector<4x128xf32> to vector<4x32xf32>
    %329 = vector.extract_strided_slice %326 {offsets = [0, 64], sizes = [4, 32], strides = [1, 1]} : vector<4x128xf32> to vector<4x32xf32>
    %330 = vector.extract_strided_slice %326 {offsets = [0, 96], sizes = [4, 32], strides = [1, 1]} : vector<4x128xf32> to vector<4x32xf32>
    %331 = arith.mulf %328, %298 : vector<4x32xf32>
    %332 = arith.mulf %327, %329 : vector<4x32xf32>
    %333 = arith.addf %331, %332 : vector<4x32xf32>
    %334 = math.tanh %333 : vector<4x32xf32>
    %335 = arith.mulf %330, %334 : vector<4x32xf32>
    %336 = vector.extract_strided_slice %335 {offsets = [0, 0], sizes = [2, 32], strides = [1, 1]} : vector<4x32xf32> to vector<2x32xf32>
    %c0_138 = arith.constant 0 : index
    %c0_139 = arith.constant 0 : index
    %337 = vector.load %arg14[%c0_138, %c0_139] : memref<4x64xf32, #tpu.memory_space<vmem>>, vector<2x32xf32>
    tpu.vector_store %arg14[%c0_138, %c0_139], %336 {strides = array<i32>} : memref<4x64xf32, #tpu.memory_space<vmem>>, vector<2x32xf32>,
    %338 = vector.extract_strided_slice %335 {offsets = [2, 0], sizes = [2, 32], strides = [1, 1]} : vector<4x32xf32> to vector<2x32xf32>
    %c2_140 = arith.constant 2 : index
    %c32_141 = arith.constant 32 : index
    %339 = vector.load %arg14[%c2_140, %c32_141] : memref<4x64xf32, #tpu.memory_space<vmem>>, vector<2x32xf32>
    tpu.vector_store %arg14[%c2_140, %c32_141], %338 {strides = array<i32>} : memref<4x64xf32, #tpu.memory_space<vmem>>, vector<2x32xf32>,
    %340 = vector.extract_strided_slice %335 {offsets = [0, 0], sizes = [2, 32], strides = [1, 1]} : vector<4x32xf32> to vector<2x32xf32>
    %341 = vector.extract_strided_slice %335 {offsets = [2, 0], sizes = [2, 32], strides = [1, 1]} : vector<4x32xf32> to vector<2x32xf32>
    %342 = vector.extract_strided_slice %86 {offsets = [14, 0], sizes = [2, 128], strides = [1, 1]} : vector<16x256xf32> to vector<2x128xf32>
    %343 = vector.extract_strided_slice %86 {offsets = [0, 128], sizes = [2, 128], strides = [1, 1]} : vector<16x256xf32> to vector<2x128xf32>
    %c0_142 = arith.constant 0 : index
    %c0_143 = arith.constant 0 : index
    %344 = vector.load %arg14[%c0_142, %c0_143] : memref<4x64xf32, #tpu.memory_space<vmem>>, vector<4x64xf32>
    %345 = arith.truncf %344 : vector<4x64xf32> to vector<4x64xbf16>
    %cst_144 = arith.constant dense<0.000000e+00> : vector<4x128xf32>
    %346 = tpu.matmul %345, %90, %cst_144 {dimension_numbers = #tpu.dot_dimension_numbers<[1], [0], [0], [1], [0, 0, 1, 1], [], []>} : vector<4x64xbf16>, vector<64x128xbf16>, vector<4x128xf32> -> vector<4x128xf32>
    %347 = tpu.concatenate %342, %343 in 0 : vector<2x128xf32>, vector<2x128xf32> -> vector<4x128xf32>
    %348 = arith.addf %347, %346 : vector<4x128xf32>
    %cst_145 = arith.constant 2.000000e+00 : f32
    %349 = vector.broadcast %cst_145 : f32 to vector<4x128xf32>
    %350 = arith.mulf %349, %348 : vector<4x128xf32>
    %351 = arith.select %96, %350, %348 : vector<4x128xi1>, vector<4x128xf32>
    %352 = arith.negf %351 : vector<4x128xf32>
    %353 = math.exp %352 : vector<4x128xf32>
    %cst_146 = arith.constant 1.000000e+00 : f32
    %354 = vector.broadcast %cst_146 : f32 to vector<4x128xf32>
    %355 = arith.addf %354, %353 : vector<4x128xf32>
    %356 = arith.divf %354, %355 : vector<4x128xf32>
    %cst_147 = arith.constant 2.000000e+00 : f32
    %357 = vector.broadcast %cst_147 : f32 to vector<4x128xf32>
    %358 = arith.mulf %357, %356 : vector<4x128xf32>
    %cst_148 = arith.constant 1.000000e+00 : f32
    %359 = vector.broadcast %cst_148 : f32 to vector<4x128xf32>
    %360 = arith.subf %358, %359 : vector<4x128xf32>
    %361 = arith.select %96, %360, %356 : vector<4x128xi1>, vector<4x128xf32>
    %362 = vector.extract_strided_slice %361 {offsets = [0, 0], sizes = [4, 32], strides = [1, 1]} : vector<4x128xf32> to vector<4x32xf32>
    %363 = vector.extract_strided_slice %361 {offsets = [0, 32], sizes = [4, 32], strides = [1, 1]} : vector<4x128xf32> to vector<4x32xf32>
    %364 = vector.extract_strided_slice %361 {offsets = [0, 64], sizes = [4, 32], strides = [1, 1]} : vector<4x128xf32> to vector<4x32xf32>
    %365 = vector.extract_strided_slice %361 {offsets = [0, 96], sizes = [4, 32], strides = [1, 1]} : vector<4x128xf32> to vector<4x32xf32>
    %366 = arith.mulf %363, %333 : vector<4x32xf32>
    %367 = arith.mulf %362, %364 : vector<4x32xf32>
    %368 = arith.addf %366, %367 : vector<4x32xf32>
    %369 = math.tanh %368 : vector<4x32xf32>
    %370 = arith.mulf %365, %369 : vector<4x32xf32>
    %371 = vector.extract_strided_slice %370 {offsets = [0, 0], sizes = [2, 32], strides = [1, 1]} : vector<4x32xf32> to vector<2x32xf32>
    %c0_149 = arith.constant 0 : index
    %c0_150 = arith.constant 0 : index
    %372 = vector.load %arg14[%c0_149, %c0_150] : memref<4x64xf32, #tpu.memory_space<vmem>>, vector<2x32xf32>
    tpu.vector_store %arg14[%c0_149, %c0_150], %371 {strides = array<i32>} : memref<4x64xf32, #tpu.memory_space<vmem>>, vector<2x32xf32>,
    %373 = vector.extract_strided_slice %370 {offsets = [2, 0], sizes = [2, 32], strides = [1, 1]} : vector<4x32xf32> to vector<2x32xf32>
    %c2_151 = arith.constant 2 : index
    %c32_152 = arith.constant 32 : index
    %374 = vector.load %arg14[%c2_151, %c32_152] : memref<4x64xf32, #tpu.memory_space<vmem>>, vector<2x32xf32>
    tpu.vector_store %arg14[%c2_151, %c32_152], %373 {strides = array<i32>} : memref<4x64xf32, #tpu.memory_space<vmem>>, vector<2x32xf32>,
    %375 = vector.extract_strided_slice %370 {offsets = [0, 0], sizes = [2, 32], strides = [1, 1]} : vector<4x32xf32> to vector<2x32xf32>
    %376 = vector.extract_strided_slice %370 {offsets = [2, 0], sizes = [2, 32], strides = [1, 1]} : vector<4x32xf32> to vector<2x32xf32>
    %377 = tpu.concatenate %130, %376 in 1 : vector<2x32xf32>, vector<2x32xf32> -> vector<2x64xf32>
    %378 = tpu.concatenate %165, %341 in 1 : vector<2x32xf32>, vector<2x32xf32> -> vector<2x64xf32>
    %379 = tpu.concatenate %200, %306 in 1 : vector<2x32xf32>, vector<2x32xf32> -> vector<2x64xf32>
    %380 = tpu.concatenate %235, %271 in 1 : vector<2x32xf32>, vector<2x32xf32> -> vector<2x64xf32>
    %381 = tpu.concatenate %270, %236 in 1 : vector<2x32xf32>, vector<2x32xf32> -> vector<2x64xf32>
    %382 = tpu.concatenate %305, %201 in 1 : vector<2x32xf32>, vector<2x32xf32> -> vector<2x64xf32>
    %383 = tpu.concatenate %340, %166 in 1 : vector<2x32xf32>, vector<2x32xf32> -> vector<2x64xf32>
    %384 = tpu.concatenate %375, %131 in 1 : vector<2x32xf32>, vector<2x32xf32> -> vector<2x64xf32>
    %cst_153 = arith.constant 0.000000e+00 : f32
    %385 = vector.broadcast %cst_153 : f32 to vector<2x128xf32>
    %c0_154 = arith.constant 0 : index
    %c0_155 = arith.constant 0 : index
    %386 = vector.load %arg12[%c0_154, %c0_155] : memref<1x128xf32, #tpu.memory_space<vmem>>, vector<1x128xf32>
    %387 = vector.broadcast %386 : vector<1x128xf32> to vector<2x128xf32>
    %388 = arith.addf %385, %387 : vector<2x128xf32>
    %389 = tpu.concatenate %377, %378, %379 in 1 : vector<2x64xf32>, vector<2x64xf32>, vector<2x64xf32> -> vector<2x192xf32>
    %390 = tpu.concatenate %378, %379, %380 in 1 : vector<2x64xf32>, vector<2x64xf32>, vector<2x64xf32> -> vector<2x192xf32>
    %391 = tpu.concatenate %379, %380, %381 in 1 : vector<2x64xf32>, vector<2x64xf32>, vector<2x64xf32> -> vector<2x192xf32>
    %392 = tpu.concatenate %380, %381, %382 in 1 : vector<2x64xf32>, vector<2x64xf32>, vector<2x64xf32> -> vector<2x192xf32>
    %393 = tpu.concatenate %381, %382, %383 in 1 : vector<2x64xf32>, vector<2x64xf32>, vector<2x64xf32> -> vector<2x192xf32>
    %394 = tpu.concatenate %382, %383, %384 in 1 : vector<2x64xf32>, vector<2x64xf32>, vector<2x64xf32> -> vector<2x192xf32>
    %395 = tpu.concatenate %389, %390, %391, %392, %393, %394 in 0 : vector<2x192xf32>, vector<2x192xf32>, vector<2x192xf32>, vector<2x192xf32>, vector<2x192xf32>, vector<2x192xf32> -> vector<12x192xf32>
    %396 = arith.truncf %395 : vector<12x192xf32> to vector<12x192xbf16>
    %c0_156 = arith.constant 0 : index
    %c0_157 = arith.constant 0 : index
    %397 = vector.load %arg5[%c0_156, %c0_157] : memref<192x128xbf16, #tpu.memory_space<vmem>>, vector<192x128xbf16>
    %cst_158 = arith.constant dense<0.000000e+00> : vector<12x128xf32>
    %398 = tpu.matmul %396, %397, %cst_158 {dimension_numbers = #tpu.dot_dimension_numbers<[1], [0], [0], [1], [0, 0, 1, 1], [], []>} : vector<12x192xbf16>, vector<192x128xbf16>, vector<12x128xf32> -> vector<12x128xf32>
    %c0_159 = arith.constant 0 : index
    %c0_160 = arith.constant 0 : index
    %399 = vector.load %arg8[%c0_159, %c0_160] : memref<1x128xf32, #tpu.memory_space<vmem>>, vector<1x128xf32>
    %400 = vector.broadcast %399 : vector<1x128xf32> to vector<12x128xf32>
    %401 = arith.addf %398, %400 : vector<12x128xf32>
    %cst_161 = arith.constant 0.000000e+00 : f32
    %402 = vector.broadcast %cst_161 : f32 to vector<12x128xf32>
    %403 = arith.maximumf %401, %402 : vector<12x128xf32>
    %404 = vector.extract_strided_slice %403 {offsets = [0, 0], sizes = [2, 128], strides = [1, 1]} : vector<12x128xf32> to vector<2x128xf32>
    %405 = vector.extract_strided_slice %403 {offsets = [2, 0], sizes = [2, 128], strides = [1, 1]} : vector<12x128xf32> to vector<2x128xf32>
    %406 = arith.maximumf %404, %405 : vector<2x128xf32>
    %407 = vector.extract_strided_slice %403 {offsets = [4, 0], sizes = [2, 128], strides = [1, 1]} : vector<12x128xf32> to vector<2x128xf32>
    %408 = arith.maximumf %406, %407 : vector<2x128xf32>
    %409 = vector.extract_strided_slice %403 {offsets = [6, 0], sizes = [2, 128], strides = [1, 1]} : vector<12x128xf32> to vector<2x128xf32>
    %410 = arith.maximumf %408, %409 : vector<2x128xf32>
    %411 = vector.extract_strided_slice %403 {offsets = [8, 0], sizes = [2, 128], strides = [1, 1]} : vector<12x128xf32> to vector<2x128xf32>
    %412 = arith.maximumf %410, %411 : vector<2x128xf32>
    %413 = vector.extract_strided_slice %403 {offsets = [10, 0], sizes = [2, 128], strides = [1, 1]} : vector<12x128xf32> to vector<2x128xf32>
    %414 = arith.maximumf %412, %413 : vector<2x128xf32>
    %415 = arith.truncf %414 : vector<2x128xf32> to vector<2x128xbf16>
    %c0_162 = arith.constant 0 : index
    %c0_163 = arith.constant 0 : index
    %416 = vector.load %arg11[%c0_162, %c0_163] : memref<384x128xbf16, #tpu.memory_space<vmem>>, vector<128x128xbf16>
    %cst_164 = arith.constant dense<0.000000e+00> : vector<2x128xf32>
    %417 = tpu.matmul %415, %416, %cst_164 {dimension_numbers = #tpu.dot_dimension_numbers<[1], [0], [0], [1], [0, 0, 1, 1], [], []>} : vector<2x128xbf16>, vector<128x128xbf16>, vector<2x128xf32> -> vector<2x128xf32>
    %418 = arith.addf %388, %417 : vector<2x128xf32>
    %419 = tpu.concatenate %377, %378, %379, %380 in 1 : vector<2x64xf32>, vector<2x64xf32>, vector<2x64xf32>, vector<2x64xf32> -> vector<2x256xf32>
    %420 = tpu.concatenate %378, %379, %380, %381 in 1 : vector<2x64xf32>, vector<2x64xf32>, vector<2x64xf32>, vector<2x64xf32> -> vector<2x256xf32>
    %421 = tpu.concatenate %379, %380, %381, %382 in 1 : vector<2x64xf32>, vector<2x64xf32>, vector<2x64xf32>, vector<2x64xf32> -> vector<2x256xf32>
    %422 = tpu.concatenate %380, %381, %382, %383 in 1 : vector<2x64xf32>, vector<2x64xf32>, vector<2x64xf32>, vector<2x64xf32> -> vector<2x256xf32>
    %423 = tpu.concatenate %381, %382, %383, %384 in 1 : vector<2x64xf32>, vector<2x64xf32>, vector<2x64xf32>, vector<2x64xf32> -> vector<2x256xf32>
    %424 = tpu.concatenate %419, %420, %421, %422, %423 in 0 : vector<2x256xf32>, vector<2x256xf32>, vector<2x256xf32>, vector<2x256xf32>, vector<2x256xf32> -> vector<10x256xf32>
    %425 = arith.truncf %424 : vector<10x256xf32> to vector<10x256xbf16>
    %c0_165 = arith.constant 0 : index
    %c0_166 = arith.constant 0 : index
    %426 = vector.load %arg6[%c0_165, %c0_166] : memref<256x128xbf16, #tpu.memory_space<vmem>>, vector<256x128xbf16>
    %cst_167 = arith.constant dense<0.000000e+00> : vector<10x128xf32>
    %427 = tpu.matmul %425, %426, %cst_167 {dimension_numbers = #tpu.dot_dimension_numbers<[1], [0], [0], [1], [0, 0, 1, 1], [], []>} : vector<10x256xbf16>, vector<256x128xbf16>, vector<10x128xf32> -> vector<10x128xf32>
    %c0_168 = arith.constant 0 : index
    %c0_169 = arith.constant 0 : index
    %428 = vector.load %arg9[%c0_168, %c0_169] : memref<1x128xf32, #tpu.memory_space<vmem>>, vector<1x128xf32>
    %429 = vector.broadcast %428 : vector<1x128xf32> to vector<10x128xf32>
    %430 = arith.addf %427, %429 : vector<10x128xf32>
    %cst_170 = arith.constant 0.000000e+00 : f32
    %431 = vector.broadcast %cst_170 : f32 to vector<10x128xf32>
    %432 = arith.maximumf %430, %431 : vector<10x128xf32>
    %433 = vector.extract_strided_slice %432 {offsets = [0, 0], sizes = [2, 128], strides = [1, 1]} : vector<10x128xf32> to vector<2x128xf32>
    %434 = vector.extract_strided_slice %432 {offsets = [2, 0], sizes = [2, 128], strides = [1, 1]} : vector<10x128xf32> to vector<2x128xf32>
    %435 = arith.maximumf %433, %434 : vector<2x128xf32>
    %436 = vector.extract_strided_slice %432 {offsets = [4, 0], sizes = [2, 128], strides = [1, 1]} : vector<10x128xf32> to vector<2x128xf32>
    %437 = arith.maximumf %435, %436 : vector<2x128xf32>
    %438 = vector.extract_strided_slice %432 {offsets = [6, 0], sizes = [2, 128], strides = [1, 1]} : vector<10x128xf32> to vector<2x128xf32>
    %439 = arith.maximumf %437, %438 : vector<2x128xf32>
    %440 = vector.extract_strided_slice %432 {offsets = [8, 0], sizes = [2, 128], strides = [1, 1]} : vector<10x128xf32> to vector<2x128xf32>
    %441 = arith.maximumf %439, %440 : vector<2x128xf32>
    %442 = arith.truncf %441 : vector<2x128xf32> to vector<2x128xbf16>
    %c128 = arith.constant 128 : index
    %c0_171 = arith.constant 0 : index
    %443 = vector.load %arg11[%c128, %c0_171] : memref<384x128xbf16, #tpu.memory_space<vmem>>, vector<128x128xbf16>
    %cst_172 = arith.constant dense<0.000000e+00> : vector<2x128xf32>
    %444 = tpu.matmul %442, %443, %cst_172 {dimension_numbers = #tpu.dot_dimension_numbers<[1], [0], [0], [1], [0, 0, 1, 1], [], []>} : vector<2x128xbf16>, vector<128x128xbf16>, vector<2x128xf32> -> vector<2x128xf32>
    %445 = arith.addf %418, %444 : vector<2x128xf32>
    %446 = tpu.concatenate %377, %378, %379, %380, %381 in 1 : vector<2x64xf32>, vector<2x64xf32>, vector<2x64xf32>, vector<2x64xf32>, vector<2x64xf32> -> vector<2x320xf32>
    %447 = tpu.concatenate %378, %379, %380, %381, %382 in 1 : vector<2x64xf32>, vector<2x64xf32>, vector<2x64xf32>, vector<2x64xf32>, vector<2x64xf32> -> vector<2x320xf32>
    %448 = tpu.concatenate %379, %380, %381, %382, %383 in 1 : vector<2x64xf32>, vector<2x64xf32>, vector<2x64xf32>, vector<2x64xf32>, vector<2x64xf32> -> vector<2x320xf32>
    %449 = tpu.concatenate %380, %381, %382, %383, %384 in 1 : vector<2x64xf32>, vector<2x64xf32>, vector<2x64xf32>, vector<2x64xf32>, vector<2x64xf32> -> vector<2x320xf32>
    %450 = tpu.concatenate %446, %447, %448, %449 in 0 : vector<2x320xf32>, vector<2x320xf32>, vector<2x320xf32>, vector<2x320xf32> -> vector<8x320xf32>
    %451 = arith.truncf %450 : vector<8x320xf32> to vector<8x320xbf16>
    %c0_173 = arith.constant 0 : index
    %c0_174 = arith.constant 0 : index
    %452 = vector.load %arg7[%c0_173, %c0_174] : memref<320x128xbf16, #tpu.memory_space<vmem>>, vector<320x128xbf16>
    %cst_175 = arith.constant dense<0.000000e+00> : vector<8x128xf32>
    %453 = tpu.matmul %451, %452, %cst_175 {dimension_numbers = #tpu.dot_dimension_numbers<[1], [0], [0], [1], [0, 0, 1, 1], [], []>} : vector<8x320xbf16>, vector<320x128xbf16>, vector<8x128xf32> -> vector<8x128xf32>
    %c0_176 = arith.constant 0 : index
    %c0_177 = arith.constant 0 : index
    %454 = vector.load %arg10[%c0_176, %c0_177] : memref<1x128xf32, #tpu.memory_space<vmem>>, vector<1x128xf32>
    %455 = vector.broadcast %454 : vector<1x128xf32> to vector<8x128xf32>
    %456 = arith.addf %453, %455 : vector<8x128xf32>
    %cst_178 = arith.constant 0.000000e+00 : f32
    %457 = vector.broadcast %cst_178 : f32 to vector<8x128xf32>
    %458 = arith.maximumf %456, %457 : vector<8x128xf32>
    %459 = vector.extract_strided_slice %458 {offsets = [0, 0], sizes = [2, 128], strides = [1, 1]} : vector<8x128xf32> to vector<2x128xf32>
    %460 = vector.extract_strided_slice %458 {offsets = [2, 0], sizes = [2, 128], strides = [1, 1]} : vector<8x128xf32> to vector<2x128xf32>
    %461 = arith.maximumf %459, %460 : vector<2x128xf32>
    %462 = vector.extract_strided_slice %458 {offsets = [4, 0], sizes = [2, 128], strides = [1, 1]} : vector<8x128xf32> to vector<2x128xf32>
    %463 = arith.maximumf %461, %462 : vector<2x128xf32>
    %464 = vector.extract_strided_slice %458 {offsets = [6, 0], sizes = [2, 128], strides = [1, 1]} : vector<8x128xf32> to vector<2x128xf32>
    %465 = arith.maximumf %463, %464 : vector<2x128xf32>
    %466 = arith.truncf %465 : vector<2x128xf32> to vector<2x128xbf16>
    %c256 = arith.constant 256 : index
    %c0_179 = arith.constant 0 : index
    %467 = vector.load %arg11[%c256, %c0_179] : memref<384x128xbf16, #tpu.memory_space<vmem>>, vector<128x128xbf16>
    %cst_180 = arith.constant dense<0.000000e+00> : vector<2x128xf32>
    %468 = tpu.matmul %466, %467, %cst_180 {dimension_numbers = #tpu.dot_dimension_numbers<[1], [0], [0], [1], [0, 0, 1, 1], [], []>} : vector<2x128xbf16>, vector<128x128xbf16>, vector<2x128xf32> -> vector<2x128xf32>
    %469 = arith.addf %445, %468 : vector<2x128xf32>
    %c0_181 = arith.constant 0 : index
    %c0_182 = arith.constant 0 : index
    %470 = vector.load %arg13[%c0_181, %c0_182] : memref<2x128xf32, #tpu.memory_space<vmem>>, vector<2x128xf32>
    tpu.vector_store %arg13[%c0_181, %c0_182], %469 {strides = array<i32>} : memref<2x128xf32, #tpu.memory_space<vmem>>, vector<2x128xf32>,
    return
  }
}

</mosaic_0001>

<bundles_post_ra>
// kernel: lstmcnn_forward.1
= control target key start
LH: loop header
LB: loop body
LE: loop exit
PB: predicated region body
PF: predicated region fallthrough
CT: control target
= control target key end

     0   :  { %18 = vsyncpa [#allocation6], 0  ;;  %s3677_s0 = inlined_call_operand.vmem [shape: s32[2,8], index: 0, kind: input, shape index: {}]   ;;  %s3678_s1 = inlined_call_operand.vmem [shape: bf16[50,1,32], index: 1, kind: input, shape index: {}]   ;;  %s3679_s2 = inlined_call_operand.vmem [shape: bf16[32,256], index: 2, kind: input, shape index: {}]   ;;  %s3680_s3 = inlined_call_operand.vmem [shape: f32[1,256], index: 3, kind: input, shape index: {}]   ;;  %s3681_s4 = inlined_call_operand.vmem [shape: bf16[64,128], index: 4, kind: input, shape index: {}]   ;;  %s3682_s5 = inlined_call_operand.hbm [shape: bf16[192,128], index: 5, kind: input, shape index: {}]   ;;  %s3683_s6 = inlined_call_operand.hbm [shape: bf16[256,128], index: 6, kind: input, shape index: {}]   ;;  %s3684_s7 = inlined_call_operand.hbm [shape: bf16[320,128], index: 7, kind: input, shape index: {}]   ;;  %s3685_s8 = inlined_call_operand.vmem [shape: f32[1,128], index: 8, kind: input, shape index: {}]   ;;  %s3686_s9 = inlined_call_operand.vmem [shape: f32[1,128], index: 9, kind: input, shape index: {}]   ;;  %s3687_s10 = inlined_call_operand.vmem [shape: f32[1,128], index: 10, kind: input, shape index: {}]   ;;  %s3688_s11 = inlined_call_operand.hbm [shape: bf16[384,128], index: 11, kind: input, shape index: {}]   ;;  %s3689_s12 = inlined_call_operand.vmem [shape: f32[1,128], index: 12, kind: input, shape index: {}]   ;;  %s3690_s13 = inlined_call_operand.hbm [shape: f32[2,128], index: 13, kind: output, shape index: {}]  }
   0x1   :  { %19 = vsyncpa [#allocation4], 0 }
   0x2   :  { %20 = vsyncpa [#allocation9], 0 }
   0x3   :  { %21 = vsyncpa [#allocation12], 0 }
   0x4   :  { %22 = vsyncpa [#allocation5], 0  ;;  %s29_s27 = sshll.u32 %s3677_s0, 4  ;;  %s2935_s28 = smov [#allocation8]   ;;  %s30_s27 = int_to_ptr.vmem [resolvable:$true] %s29_s27 }
   0x5   :  { %s58_s29 = sshll.u32 %s2935_s28, 4  ;;  %s2803_s15 = scalar_lea.hbm %s3683_s6, 2048  ;;  %s59_s29 = int_to_ptr.vmem [resolvable:$true] %s58_s29 }
   0x6   :  { %p2804_p0 = scmp.ne.s32.totalorder %s3683_s6, %s2803_s15  ;;  %p2807_p1 = scmp.lt.u32.totalorder %s2803_s15, %s3683_s6 }
   0x8   :  { %p2809_p2 = pnand %p2807_p1, %p2804_p0 }
   0xa   :  { %2812 = shalt.err (!%p2809_p2)
}
   0xb   :  { %s2813_s20 = scalar_lea.vmem %s59_s29, 2048  ;;  %p2818_p4 = scmp.lt.s32.totalorder %s59_s29, %s59_s29 }
   0xc   :  { %p2814_p3 = scmp.ne.s32.totalorder %s59_s29, %s2813_s20  ;;  %p2819_p5 = scmp.lt.s32.totalorder %s2813_s20, %s2813_s20 }
   0xe   :  { %p2820_p6 = por %p2819_p5, %p2818_p4 }
  0x10   :  { %p2821_p7 = pnand %p2820_p6, %p2814_p3 }
  0x12   :  { %2824 = shalt.err (!%p2821_p7)
}
  0x13   :  { %s2936_s0 = smov 64   ;;  %s2937_s21 = smov 4  }
  0x14   :  { %64 = dma.hbm_to_vmem [thread:$0]  %s3683_s6, 2048, %s59_s29, [#allocation9], %s2936_s0, %s2936_s0, %s2937_s21  }
  0x15   :  { %s2825_s24 = scalar_lea.vmem %s30_s27, 32  ;;  %p2830_p9 = scmp.lt.s32.totalorder %s30_s27, %s30_s27 }
  0x16   :  { %p2826_p8 = scmp.ne.s32.totalorder %s30_s27, %s2825_s24  ;;  %p2831_p10 = scmp.lt.s32.totalorder %s2825_s24, %s2825_s24 }
  0x18   :  { %p2832_p11 = por %p2831_p10, %p2830_p9 }
  0x1a   :  { %p2833_p12 = pnand %p2832_p11, %p2826_p8 }
  0x1c   :  { %2836 = shalt.err (!%p2833_p12)
}
  0x1d   :  { %s2938_s25 = smov [#allocation3]   ;;  %s2939_s26 = smov [#allocation7]  }
  0x1e   :  { %32 = dma.vmem_to_smem %s30_s27, 32, %s2938_s25, [#allocation6]  }
  0x1f   :  { %s46_s28 = sshll.u32 %s2939_s26, 4  ;;  %s2940_s30 = smov [#allocation10]   ;;  %s47_s28 = int_to_ptr.vmem [resolvable:$true] %s46_s28 }
  0x20   :  { %s70_s14 = sshll.u32 %s2940_s30, 4  ;;  %s2837_s6 = scalar_lea.hbm %s3682_s5, 1536  ;;  %s3035_s14 = int_to_ptr.vmem [resolvable:$true] %s70_s14 }
  0x21   :  { %p2838_p13 = scmp.ne.s32.totalorder %s3682_s5, %s2837_s6  ;;  %p2841_p0 = scmp.lt.u32.totalorder %s2837_s6, %s3682_s5 }
  0x23   :  { %p2843_p1 = pnand %p2841_p0, %p2838_p13 }
  0x25   :  { %2846 = shalt.err (!%p2843_p1)
}
  0x26   :  { %s2847_s27 = scalar_lea.vmem %s47_s28, 1536  ;;  %p2852_p3 = scmp.lt.s32.totalorder %s47_s28, %s47_s28 }
  0x27   :  { %p2848_p2 = scmp.ne.s32.totalorder %s47_s28, %s2847_s27  ;;  %p2853_p4 = scmp.lt.s32.totalorder %s2847_s27, %s2847_s27 }
  0x29   :  { %p2854_p5 = por %p2853_p4, %p2852_p3 }
  0x2b   :  { %p2855_p6 = pnand %p2854_p5, %p2848_p2 }
  0x2d   :  { %2858 = shalt.err (!%p2855_p6)
}
  0x2e   :  { %52 = dma.hbm_to_vmem [thread:$0]  %s3682_s5, 1536, %s47_s28, [#allocation4], %s2936_s0, %s2936_s0, %s2937_s21  }
  0x2f   :  { %s2859_s25 = scalar_lea.hbm %s3684_s7, 2560 }
  0x30   :  { %p2860_p7 = scmp.ne.s32.totalorder %s3684_s7, %s2859_s25  ;;  %p2863_p8 = scmp.lt.u32.totalorder %s2859_s25, %s3684_s7 }
  0x32   :  { %p2865_p9 = pnand %p2863_p8, %p2860_p7 }
  0x34   :  { %2868 = shalt.err (!%p2865_p9)
}
  0x35   :  { %s2869_s6 = scalar_lea.vmem %s3035_s14, 2560  ;;  %p2874_p11 = scmp.lt.s32.totalorder %s3035_s14, %s3035_s14 }
  0x36   :  { %p2870_p10 = scmp.ne.s32.totalorder %s3035_s14, %s2869_s6  ;;  %p2875_p12 = scmp.lt.s32.totalorder %s2869_s6, %s2869_s6 }
  0x38   :  { %p2876_p13 = por %p2875_p12, %p2874_p11 }
  0x3a   :  { %p2877_p0 = pnand %p2876_p13, %p2870_p10 }
  0x3c   :  { %2880 = shalt.err (!%p2877_p0)
}
  0x3d   :  { %76 = dma.hbm_to_vmem [thread:$0]  %s3684_s7, 2560, %s3035_s14, [#allocation9], %s2936_s0, %s2936_s0, %s2937_s21  }
  0x3e   :  { %s2941_s29 = smov [#allocation11]   ;;  %s2881_s27 = scalar_lea.hbm %s3688_s11, 3072 }
  0x3f   :  { %s88_s17 = sshll.u32 %s2941_s29, 4  ;;  %p2882_p1 = scmp.ne.s32.totalorder %s3688_s11, %s2881_s27  ;;  %s89_s17 = int_to_ptr.vmem [resolvable:$true] %s88_s17 }
  0x40   :  { %p2885_p2 = scmp.lt.u32.totalorder %s2881_s27, %s3688_s11 }
  0x42   :  { %p2887_p3 = pnand %p2885_p2, %p2882_p1 }
  0x44   :  { %2890 = shalt.err (!%p2887_p3)
}
  0x45   :  { %s2891_s25 = scalar_lea.vmem %s89_s17, 3072  ;;  %p2896_p5 = scmp.lt.s32.totalorder %s89_s17, %s89_s17 }
  0x46   :  { %p2892_p4 = scmp.ne.s32.totalorder %s89_s17, %s2891_s25  ;;  %p2897_p6 = scmp.lt.s32.totalorder %s2891_s25, %s2891_s25 }
  0x48   :  { %p2898_p7 = por %p2897_p6, %p2896_p5 }
  0x4a   :  { %p2899_p8 = pnand %p2898_p7, %p2892_p4 }
  0x4c   :  { %2902 = shalt.err (!%p2899_p8)
}
  0x4d   :  { %94 = dma.hbm_to_vmem [thread:$0]  %s3688_s11, 3072, %s89_s17, [#allocation12], %s2936_s0, %s2936_s0, %s2937_s21  }
  0x4e   :  { %2925 = dma.done.wait [#allocation6], 32  }
  0x4f   :  { %2926 = vsyncadd [#allocation6], 4294967264 }
  0x50   :  { %2927 = dma.done.wait [#allocation4], 1536  }
  0x51   :  { %2928 = vsyncadd [#allocation4], 4294965760 }
  0x52   :  { %2929 = dma.done.wait [#allocation9], 4608  }
  0x53   :  { %2930 = vsyncadd [#allocation9], 4294962688 }
  0x54   :  { %2931 = dma.done.wait [#allocation12], 3072  }
  0x55   :  { %2932 = vsyncadd [#allocation12], 4294964224 }
  0x56   :  { %112 = sfence }
  0x57   :  { %v3090_v0 = vld [vmem:[%s3681_s4] sm:$0xff]   ;;  %v2942_v1 = vmov 0.0   ;;  %v179_v3 = vlaneseq  ;;  %v2943_v5 = vmov 0   ;;  %v3105_v6 = vld [vmem:[%s3681_s4 + $0x8] sm:$0xff]   ;;  %s114_s28 = sld [smem:[#allocation3]]  ;;  %v3120_v10 = vld [vmem:[%s3681_s4 + $0x10] sm:$0xff]  }
  0x58   :  { %2455 = vmatprep.subr.bf16.mxu1 %v2942_v1  ;;  %v2670_v2 = vld [vmem:[%s3679_s2 + $0x4] ss:$8 sps:$4 sm:$0xff]   ;;  %v2672_v4 = vld [vmem:[%s3679_s2] ss:$8 sps:$4 sm:$0xff]   ;;  %356 = vmatprep.mubr.bf16.mxu0 %v2943_v5  ;;  %v2674_v7 = vld [vmem:[%s3679_s2 + $0x14] ss:$8 sps:$4 sm:$0xff]  }
  0x59   :  { %2456 = vmatpush3.bf16.msra.mxu1 %v3090_v0  ;;  %324 = vmatprep.subr.bf16.mxu0 %v2670_v2  ;;  %v2676_v8 = vld [vmem:[%s3679_s2 + $0x10] ss:$8 sps:$4 sm:$0xff]   ;;  %s2213_s27 = sld [smem:[#allocation3 + $0x80]]  ;;  %v3114_v9 = vshrl.u32 %v179_v3, 7  ;;  %s3122_s23 = sld [smem:[#allocation3 + $0x1]]  ;;  %vm262_vm0 = vcmask 1040384  }
  0x5a   :  { %2457 = vmatprep.subr.bf16.mxu1 %v2942_v1  ;;  %325 = vmatpush1.bf16.msra.mxu0 %v2672_v4  ;;  %s3124_s24 = sld [smem:[#allocation3 + $0x81]]  ;;  %s3127_s25 = sld [smem:[#allocation3 + $0x2]]  ;;  %v3146_v12 = vld [vmem:[%s3681_s4 + $0x18] sm:$0xff]   ;;  %vm367_vm1 = vcmask 519168   ;;  %vm264_vm2 = vcmask 1041408   ;;  %vm266_vm3 = vcmask 1042432  }
  0x5b   :  { %326 = vmatprep.subr.bf16.mxu0 %v2674_v7  ;;  %s3129_s2 = sld [smem:[#allocation3 + $0x82]]  ;;  %s3131_s7 = sld [smem:[#allocation3 + $0x3]]  ;;  %v3141_v11 = vsub.s32 0, %v3114_v9  ;;  %vm268_vm4 = vcmask 1043456   ;;  %vm270_vm5 = vcmask 1044480   ;;  %vm2944_vm6 = vmmov 0  }
  0x5c   :  { %s3133_s14 = sld [smem:[#allocation3 + $0x83]]  ;;  %s3138_s16 = sld [smem:[#allocation3 + $0x4]]  ;;  %2463 = vmatprep.mubr.msk.bf16.mxu1 %vm2944_vm6, %v2942_v1  ;;  %368 = vst.msk [vmem:[#allocation2] sm:$0xf] %vm367_vm1, %v2942_v1  ;;  %vm272_vm7 = vcmask 1045504   ;;  %vm408_vm8 = vcmask 523264  }
  0x5d   :  { %2458 = vmatpush3.bf16.msra.mxu1 %v3105_v6  ;;  %s115_s15 = scalar_lea.vmem %s3678_s1, %s114_s28  ;;  %s3150_s6 = sld [smem:[#allocation3 + $0x84]]  ;;  %vm274_vm9 = vcmask 1046528   ;;  %vm320_vm10 = vcmask 261120   ;;  %vm494_vm14 = vcmask 519426   ;;  %vm489_vm15 = vcmask 254976  }
  0x5e   :  { %2459 = vmatprep.subr.bf16.mxu1 %v2942_v1  ;;  %327 = vmatpush1.bf16.msra.mxu0 %v2676_v8  ;;  %v116_v13 = vld [vmem:[%s115_s15] sm:$0x1]  ;;  %s3152_s5 = sld [smem:[#allocation3 + $0x5]]  ;;  %s3210_s29 = sld [smem:[#allocation3 + $0x86]] }
  0x5f   :  { %2491 = vmatprep.subr.bf16.mxu0 %v2942_v1  ;;  %s119_s17 = scalar_lea.vmem %s3678_s1, %s2213_s27  ;;  %s3157_s18 = sld [smem:[#allocation3 + $0x85]]  ;;  %v117_v15 = vunpack.c.l.bf16 %v116_v13 }
  0x60   :  { %v120_v14 = vld [vmem:[%s119_s17] sm:$0x1]  ;;  %s123_s22 = scalar_lea.vmem %s3678_s1, %s3122_s23  ;;  %s127_s15 = scalar_lea.vmem %s3678_s1, %s3124_s24 }
  0x61   :  { %2460 = vmatpush3.bf16.msra.mxu1 %v3120_v10  ;;  %v121_v16 = vunpack.c.l.bf16 %v120_v14  ;;  %v124_v17 = vld [vmem:[%s123_s22] sm:$0x1]  ;;  %s131_s24 = scalar_lea.vmem %s3678_s1, %s3127_s25  ;;  %s135_s28 = scalar_lea.vmem %s3678_s1, %s3129_s2 }
  0x62   :  { %2461 = vmatprep.subr.bf16.mxu1 %v2942_v1  ;;  %v128_v18 = vld [vmem:[%s127_s15] sm:$0x1]  ;;  %v125_v19 = vunpack.c.l.bf16 %v124_v17  ;;  %s139_s19 = scalar_lea.vmem %s3678_s1, %s3131_s7  ;;  %s143_s26 = scalar_lea.vmem %s3678_s1, %s3133_s14 }
  0x63   :  { %v129_v20 = vunpack.c.l.bf16 %v128_v18  ;;  %v132_v21 = vld [vmem:[%s131_s24] sm:$0x1]  ;;  %s147_s30 = scalar_lea.vmem %s3678_s1, %s3138_s16  ;;  %s3192_s15 = sld [smem:[#allocation3 + $0x6]]  ;;  %v182_v26 = vrot.slane %v121_v16, %v3141_v11 }
  0x64   :  { %v136_v22 = vld [vmem:[%s135_s28] sm:$0x1]  ;;  %v133_v23 = vunpack.c.l.bf16 %v132_v21  ;;  %s151_s27 = scalar_lea.vmem %s3678_s1, %s3150_s6  ;;  %s155_s11 = scalar_lea.vmem %s3678_s1, %s3152_s5  ;;  %v188_v29 = vrot.slane %v125_v19, %v3141_v11 }
  0x65   :  { %2462 = vmatpush3.bf16.msra.mxu1 %v3146_v12  ;;  %v137_v24 = vunpack.c.l.bf16 %v136_v22  ;;  %v140_v25 = vld [vmem:[%s139_s19] sm:$0x1]  ;;  %v194_v30 = vrot.slane %v129_v20, %v3141_v11  ;;  %s159_s28 = scalar_lea.vmem %s3678_s1, %s3157_s18  ;;  %v263_v34 = vsel %vm262_vm0, %v117_v15, %v182_v26  ;;  %s3214_s6 = sld [smem:[#allocation3 + $0x7]]  ;;  %v296_v26 = vsub.s32 1, %v3114_v9 }
  0x66   :  { %2467 = vmatprep.subr.bf16.mxu1 %v2942_v1  ;;  %v144_v27 = vld [vmem:[%s143_s26] sm:$0x1]  ;;  %v200_v33 = vrot.slane %v133_v23, %v3141_v11  ;;  %v141_v35 = vunpack.c.l.bf16 %v140_v25  ;;  %s3216_s5 = sld [smem:[#allocation3 + $0x87]]  ;;  %v265_v42 = vsel %vm264_vm2, %v263_v34, %v188_v29  ;;  %s167_s26 = scalar_lea.vmem %s3678_s1, %s3210_s29  ;;  %v378_v29 = vand.u32 127, %v179_v3 }
  0x67   :  { %v148_v28 = vld [vmem:[%s147_s30] sm:$0x1]  ;;  %v206_v41 = vrot.slane %v137_v24, %v3141_v11  ;;  %v267_v46 = vsel %vm266_vm3, %v265_v42, %v194_v30  ;;  %v145_v48 = vunpack.c.l.bf16 %v144_v27 }
  0x68   :  { %v152_v31 = vld [vmem:[%s151_s27] sm:$0x1]  ;;  %v149_v36 = vunpack.c.l.bf16 %v148_v28  ;;  %v269_v50 = vsel %vm268_vm4, %v267_v46, %v200_v33  ;;  %v212_v52 = vrot.slane %v141_v35, %v3141_v11  ;;  %vm379_vm11 = vcmp.ge.s32.totalorder %v378_v29, 64 }
  0x69   :  { %v156_v32 = vld [vmem:[%s155_s11] sm:$0x1]  ;;  %v153_v37 = vunpack.c.l.bf16 %v152_v31  ;;  %s163_s19 = scalar_lea.vmem %s3678_s1, %s3192_s15  ;;  %v271_v55 = vsel %vm270_vm5, %v269_v50, %v206_v41  ;;  %v218_v62 = vrot.slane %v145_v48, %v3141_v11  ;;  %vm380_vm12 = vcmp.lt.s32.totalorder %v378_v29, 96 }
  0x6a   :  { %v157_v38 = vunpack.c.l.bf16 %v156_v32  ;;  %v160_v39 = vld [vmem:[%s159_s28] sm:$0x1]  ;;  %v273_v7 = vsel %vm272_vm7, %v271_v55, %v212_v52  ;;  %vm3307_vm13 = vmand %vm379_vm11, %vm380_vm12 }
  0x6b   :  { %v161_v40 = vunpack.c.l.bf16 %v160_v39  ;;  %v382_v43 = vld [vmem:[#allocation2] sm:$0xf]  ;;  %v224_v44 = vrot.slane %v153_v37, %v3141_v11  ;;  %s171_s30 = scalar_lea.vmem %s3678_s1, %s3214_s6  ;;  %v275_v16 = vsel %vm274_vm9, %v273_v7, %v218_v62 }
  0x6c   :  { %v230_v45 = vrot.slane %v157_v38, %v3141_v11  ;;  %v383_v47 = vpack.c.bf16 %v382_v43, %v382_v43  ;;  %v164_v51 = vld [vmem:[%s163_s19] sm:$0x1]  ;;  %s175_s14 = scalar_lea.vmem %s3678_s1, %s3216_s5  ;;  %s2946_s19 = smov [#allocation13]  }
  0x6d   :  { %v236_v49 = vrot.slane %v161_v40, %v3141_v11  ;;  %v276_v53 = vsel %vm262_vm0, %v149_v36, %v224_v44  ;;  %v165_v54 = vunpack.c.l.bf16 %v164_v51  ;;  %v168_v57 = vld [vmem:[%s167_s26] sm:$0x1]  ;;  %s2185_s20 = sshll.u32 %s2946_s19, 4  ;;  %s2186_s20 = int_to_ptr.vmem [resolvable:$true] %s2185_s20 }
  0x6e   :  { %2464 = vmatmul.mubr.msk.bf16.vlgmr.msra.gmra.mrb[0].mxu1 %vm408_vm8, %v383_v47  ;;  %v277_v56 = vsel %vm264_vm2, %v276_v53, %v230_v45  ;;  %v169_v59 = vunpack.c.l.bf16 %v168_v57  ;;  %v172_v60 = vld [vmem:[%s171_s30] sm:$0x1]  ;;  %s2903_s22 = scalar_lea.vmem %s2186_s20, 32  ;;  %p2908_p10 = scmp.lt.s32.totalorder %s2186_s20, %s2186_s20 }
  0x6f   :  { %2468 = vmatpush3.bf16.msra.mxu1 %v3090_v0  ;;  %2475 = vmatprep.mubr.msk.bf16.mxu1 %vm2944_vm6, %v2942_v1  ;;  %v278_v58 = vsel %vm266_vm3, %v277_v56, %v236_v49  ;;  %v176_v61 = vld [vmem:[%s175_s14] sm:$0x1]  ;;  %v242_v63 = vrot.slane %v165_v54, %v3141_v11  ;;  %v173_v2 = vunpack.c.l.bf16 %v172_v60  ;;  %p2904_p9 = scmp.ne.s32.totalorder %s2186_s20, %s2903_s22  ;;  %p2909_p11 = scmp.lt.s32.totalorder %s2903_s22, %s2903_s22 }
  0x70   :  { %2469 = vmatprep.subr.bf16.mxu1 %v2942_v1  ;;  %v177_v4 = vunpack.c.l.bf16 %v176_v61  ;;  %v248_v8 = vrot.slane %v169_v59, %v3141_v11  ;;  %v288_v25 = vld [vmem:[%s3680_s3] sm:$0x3]  ;;  %s2945_s3 = smov 32  }
  0x71   :  { %v279_v13 = vsel %vm268_vm4, %v278_v58, %v242_v63  ;;  %v254_v14 = vrot.slane %v173_v2, %v3141_v11  ;;  %v293_v27 = vrot.slane %v288_v25, %v3141_v11  ;;  %v297_v28 = vrot.slane %v288_v25, %v296_v26  ;;  %p2910_p12 = por %p2909_p11, %p2908_p10 }
  0x72   :  { %v260_v15 = vrot.slane %v177_v4, %v3141_v11  ;;  %v280_v17 = vsel %vm270_vm5, %v279_v13, %v248_v8 }
  0x73   :  { %2470 = vmatpush3.bf16.msra.mxu1 %v3105_v6  ;;  %v281_v18 = vsel %vm272_vm7, %v280_v17, %v254_v14  ;;  %p2911_p13 = pnand %p2910_p12, %p2904_p9 }
  0x74   :  { %2471 = vmatprep.subr.bf16.mxu1 %v2942_v1  ;;  %v282_v19 = vsel %vm274_vm9, %v281_v18, %v260_v15 }
  0x75   :  { %v283_v20 = vpack.c.bf16 %v282_v19, %v275_v16 }
  0x77   :  { %2472 = vmatpush3.bf16.msra.mxu1 %v3120_v10  ;;  %2232 = vmatmul.mubr.msk.bf16.vlgmr.msra.gmra.mrb[0].mxu0 %vm320_vm10, %v283_v20 }
  0x78   :  { %2473 = vmatprep.subr.bf16.mxu1 %v2942_v1  ;;  %2492 = vmatpush3.bf16.msra.mxu0 %v3090_v0 }
  0x79   :  { %2493 = vmatprep.subr.bf16.mxu0 %v2942_v1  ;;  %2499 = vmatprep.mubr.msk.bf16.mxu0 %vm2944_vm6, %v2942_v1 }
  0x7b   :  { %2474 = vmatpush3.bf16.msra.mxu1 %v3146_v12 }
  0x7c   :  { %2479 = vmatprep.subr.bf16.mxu1 %v2942_v1  ;;  %2494 = vmatpush3.bf16.msra.mxu0 %v3105_v6 }
  0x7d   :  { %2495 = vmatprep.subr.bf16.mxu0 %v2942_v1 }
  0x80   :  { %2496 = vmatpush3.bf16.msra.mxu0 %v3120_v10 }
  0x81   :  { %2497 = vmatprep.subr.bf16.mxu0 %v2942_v1 }
  0x84   :  { %2498 = vmatpush3.bf16.msra.mxu0 %v3146_v12 }
  0x85   :  { %2515 = vmatprep.subr.bf16.mxu0 %v2942_v1 }
 0x141   :  { %v446_v21 = vpop.f32.mrb[0].mxu1 }
 0x142   :  { %v2465_v22 = vpop.f32.mrb[1].mxu1 }
 0x143   :  { %v449_v23 = vpop.f32.mrb[2].mxu1 }
 0x144   :  { %v2466_v24 = vpop.f32.mrb[3].mxu1 }
 0x14a   :  { %v358_v30 = vpop.f32.mrb[0].mxu0 }
 0x14b   :  { %v359_v31 = vadd.f32 %v358_v30, %v293_v27  ;;  %v360_v32 = vpop.f32.mrb[1].mxu0 }
 0x14c   :  { %v361_v33 = vadd.f32 %v360_v32, %v297_v28  ;;  %v362_v34 = vpop.f32.mrb[2].mxu0 }
 0x14d   :  { %v363_v35 = vadd.f32 %v362_v34, %v293_v27  ;;  %v364_v36 = vpop.f32.mrb[3].mxu0  ;;  %v542_v37 = vrot.slane %v359_v31, 2  ;;  %v630_v38 = vrot.slane %v359_v31, 4  ;;  %v716_v42 = vrot.slane %v359_v31, 6 }
 0x14e   :  { %v365_v39 = vadd.f32 %v364_v36, %v297_v28  ;;  %v805_v40 = vrot.slane %v361_v33, 4  ;;  %v894_v41 = vrot.slane %v361_v33, 2  ;;  %v1068_v9 = vrot.slane %v361_v33, 6 }
 0x14f   :  { %v892_v11 = vrot.slane %v363_v35, 2  ;;  %v980_v43 = vrot.slane %v363_v35, 4  ;;  %v1066_v44 = vrot.slane %v363_v35, 6 }
 0x150   :  { %v453_v3 = vrot.slane %v365_v39, 4  ;;  %v544_v45 = vrot.slane %v365_v39, 2  ;;  %v3286_v46 = vsel %vm264_vm2, %v630_v38, %v365_v39  ;;  %v718_v47 = vrot.slane %v365_v39, 6 }
 0x151   :  { %v3289_v48 = vsel %vm264_vm2, %v363_v35, %v805_v40  ;;  %v3292_v49 = vsel %vm264_vm2, %v892_v11, %v894_v41  ;;  %v3295_v50 = vsel %vm264_vm2, %v980_v43, %v361_v33  ;;  %v3298_v51 = vsel %vm264_vm2, %v1066_v44, %v1068_v9 }
 0x152   :  { %v455_v52 = vsel %vm264_vm2, %v359_v31, %v453_v3  ;;  %v546_v53 = vsel %vm264_vm2, %v542_v37, %v544_v45  ;;  %v3303_v54 = vsel %vm264_vm2, %v716_v42, %v718_v47 }
 0x153   :  { %v456_v55 = vadd.f32 %v455_v52, %v446_v21 }
 0x155   :  { %v457_v57 = vmul.f32 2.0, %v456_v55 }
 0x157   :  { %v458_v58 = vsel %vm3307_vm13, %v457_v57, %v456_v55 }
 0x158   :  { %v2238_v59 = vmul.f32 -1.442695, %v458_v58 }
 0x15a   :  { %2751 = vpow2.f32 %v2238_v59 }
 0x164   :  { %v2752_v60 = vpop.eup %2751 }
 0x165   :  { %v462_v61 = vadd.f32 1.0, %v2752_v60 }
 0x167   :  { %2753 = vrcp.f32 %v462_v61 }
 0x171   :  { %v2754_v62 = vpop.eup %2753 }
 0x172   :  { %v465_v63 = vmul.f32 2.0, %v2754_v62 }
 0x174   :  { %v2239_v2 = vadd.f32 -1.0, %v465_v63 }
 0x176   :  { %v467_v4 = vsel %vm3307_vm13, %v2239_v2, %v2754_v62 }
 0x177   :  { %470 = vrot.lane.b32.xlu0 %v467_v4, %s2936_s0  ;;  %v468_v13 = vmul.f32 0.0, %v467_v4 }
 0x1e9   :  { %v471_v7 = vpop.permute.xlu0 %470 }
 0x1ea   :  { %v473_v8 = vmul.f32 %v471_v7, %v467_v4 }
 0x1ec   :  { %475 = vrot.lane.b32.xlu0 %v473_v8, %s2945_s3 }
 0x25e   :  { %v476_v14 = vpop.permute.xlu0 %475 }
 0x25f   :  { %v478_v15 = vadd.f32 %v476_v14, %v468_v13 }
 0x261   :  { %2755 = vtanh.f32 %v478_v15 }
 0x26b   :  { %v2756_v16 = vpop.eup %2755 }
 0x26c   :  { %481 = vrot.lane.b32.xlu1 %v2756_v16, %s2936_s0 }
 0x2de   :  { %v482_v17 = vpop.permute.xlu1 %481 }
 0x2df   :  { %v3318_v18 = vmul.f32 %v482_v17, %v467_v4 }
 0x2e1   :  { %491 = vrot.lane.b32.xlu0 %v3318_v18, %s2936_s0  ;;  %486 = vrot.lane.b32.xlu1 %v3318_v18, %s2945_s3 }
 0x353   :  { %v492_v19 = vpop.permute.xlu0 %491  ;;  %v3324_v20 = vpop.permute.xlu1 %486 }
 0x354   :  { %495 = vst.msk [vmem:[#allocation2] sm:$0xc] %vm494_vm14, %v492_v19 }
 0x355   :  { %490 = vst.msk [vmem:[#allocation2] sm:$0x3] %vm489_vm15, %v3324_v20 }
 0x35c   :  { %v496_v21 = vld [vmem:[#allocation2] sm:$0xf] }
 0x35d   :  { %v497_v22 = vpack.c.bf16 %v496_v21, %v496_v21 }
 0x35f   :  { %2476 = vmatmul.mubr.msk.bf16.vlgmr.msra.gmra.mrb[4].mxu1 %vm408_vm8, %v497_v22 }
 0x360   :  { %2480 = vmatpush3.bf16.msra.mxu1 %v3090_v0  ;;  %2487 = vmatprep.mubr.msk.bf16.mxu1 %vm2944_vm6, %v2942_v1 }
 0x361   :  { %2481 = vmatprep.subr.bf16.mxu1 %v2942_v1 }
 0x364   :  { %2482 = vmatpush3.bf16.msra.mxu1 %v3105_v6 }
 0x365   :  { %2483 = vmatprep.subr.bf16.mxu1 %v2942_v1 }
 0x368   :  { %2484 = vmatpush3.bf16.msra.mxu1 %v3120_v10 }
 0x369   :  { %2485 = vmatprep.subr.bf16.mxu1 %v2942_v1 }
 0x36c   :  { %2486 = vmatpush3.bf16.msra.mxu1 %v3146_v12 }
 0x36d   :  { %2503 = vmatprep.subr.bf16.mxu1 %v2942_v1 }
 0x432   :  { %v535_v23 = vpop.f32.mrb[4].mxu1 }
 0x433   :  { %v547_v24 = vadd.f32 %v546_v53, %v535_v23  ;;  %v2477_v25 = vpop.f32.mrb[5].mxu1 }
 0x434   :  { %v538_v26 = vpop.f32.mrb[6].mxu1 }
 0x435   :  { %v548_v27 = vmul.f32 2.0, %v547_v24  ;;  %v2478_v28 = vpop.f32.mrb[7].mxu1 }
 0x437   :  { %v549_v29 = vsel %vm3307_vm13, %v548_v27, %v547_v24 }
 0x438   :  { %v2241_v30 = vmul.f32 -1.442695, %v549_v29 }
 0x43a   :  { %2757 = vpow2.f32 %v2241_v30 }
 0x444   :  { %v2758_v31 = vpop.eup %2757 }
 0x445   :  { %v553_v32 = vadd.f32 1.0, %v2758_v31 }
 0x447   :  { %2759 = vrcp.f32 %v553_v32 }
 0x451   :  { %v2760_v33 = vpop.eup %2759 }
 0x452   :  { %v556_v34 = vmul.f32 2.0, %v2760_v33 }
 0x454   :  { %v2242_v35 = vadd.f32 -1.0, %v556_v34 }
 0x456   :  { %v558_v36 = vsel %vm3307_vm13, %v2242_v35, %v2760_v33 }
 0x457   :  { %561 = vrot.lane.b32.xlu1 %v558_v36, %s2936_s0  ;;  %v559_v39 = vmul.f32 %v558_v36, %v478_v15 }
 0x4c9   :  { %v562_v37 = vpop.permute.xlu1 %561 }
 0x4ca   :  { %v564_v38 = vmul.f32 %v562_v37, %v558_v36 }
 0x4cc   :  { %566 = vrot.lane.b32.xlu0 %v564_v38, %s2945_s3 }
 0x53e   :  { %v567_v40 = vpop.permute.xlu0 %566 }
 0x53f   :  { %v569_v41 = vadd.f32 %v567_v40, %v559_v39 }
 0x541   :  { %2761 = vtanh.f32 %v569_v41 }
 0x54b   :  { %v2762_v9 = vpop.eup %2761 }
 0x54c   :  { %572 = vrot.lane.b32.xlu1 %v2762_v9, %s2936_s0 }
 0x5be   :  { %v573_v42 = vpop.permute.xlu1 %572 }
 0x5bf   :  { %v3347_v11 = vmul.f32 %v573_v42, %v558_v36 }
 0x5c1   :  { %581 = vrot.lane.b32.xlu1 %v3347_v11, %s2936_s0  ;;  %577 = vrot.lane.b32.xlu0 %v3347_v11, %s2945_s3 }
 0x633   :  { %v582_v43 = vpop.permute.xlu1 %581  ;;  %v3353_v44 = vpop.permute.xlu0 %577 }
 0x634   :  { %584 = vst.msk [vmem:[#allocation2] sm:$0xc] %vm494_vm14, %v582_v43 }
 0x635   :  { %580 = vst.msk [vmem:[#allocation2] sm:$0x3] %vm489_vm15, %v3353_v44 }
 0x63c   :  { %v585_v3 = vld [vmem:[#allocation2] sm:$0xf] }
 0x63d   :  { %v586_v45 = vpack.c.bf16 %v585_v3, %v585_v3 }
 0x63f   :  { %2488 = vmatmul.mubr.msk.bf16.vlgmr.msra.gmra.mrb[8].mxu1 %vm408_vm8, %v586_v45 }
 0x640   :  { %2504 = vmatpush3.bf16.msra.mxu1 %v3090_v0  ;;  %2511 = vmatprep.mubr.msk.bf16.mxu1 %vm2944_vm6, %v2942_v1 }
 0x641   :  { %2505 = vmatprep.subr.bf16.mxu1 %v2942_v1 }
 0x644   :  { %2506 = vmatpush3.bf16.msra.mxu1 %v3105_v6 }
 0x645   :  { %2507 = vmatprep.subr.bf16.mxu1 %v2942_v1 }
 0x648   :  { %2508 = vmatpush3.bf16.msra.mxu1 %v3120_v10 }
 0x649   :  { %2509 = vmatprep.subr.bf16.mxu1 %v2942_v1 }
 0x64c   :  { %2510 = vmatpush3.bf16.msra.mxu1 %v3146_v12 }
 0x64d   :  { %2527 = vmatprep.subr.bf16.mxu1 %v2942_v1 }
 0x712   :  { %v624_v47 = vpop.f32.mrb[8].mxu1 }
 0x713   :  { %v633_v52 = vadd.f32 %v3286_v46, %v624_v47  ;;  %v2489_v53 = vpop.f32.mrb[9].mxu1 }
 0x714   :  { %v627_v55 = vpop.f32.mrb[10].mxu1  ;;  %v2800_v53 = vld [vmem:[%s3681_s4 + $0x8] sm:$0xff]  }
 0x715   :  { %v634_v57 = vmul.f32 2.0, %v633_v52  ;;  %v2490_v58 = vpop.f32.mrb[11].mxu1 }
 0x717   :  { %v635_v59 = vsel %vm3307_vm13, %v634_v57, %v633_v52  ;;  %v2799_v52 = vld [vmem:[%s3681_s4] sm:$0xff]  }
 0x718   :  { %v2244_v60 = vmul.f32 -1.442695, %v635_v59 }
 0x71a   :  { %2763 = vpow2.f32 %v2244_v60 }
 0x724   :  { %v2764_v61 = vpop.eup %2763 }
 0x725   :  { %v639_v62 = vadd.f32 1.0, %v2764_v61 }
 0x727   :  { %2765 = vrcp.f32 %v639_v62 }
 0x731   :  { %v2766_v63 = vpop.eup %2765 }
 0x732   :  { %v642_v2 = vmul.f32 2.0, %v2766_v63 }
 0x734   :  { %v2245_v4 = vadd.f32 -1.0, %v642_v2 }
 0x736   :  { %v644_v7 = vsel %vm3307_vm13, %v2245_v4, %v2766_v63 }
 0x737   :  { %647 = vrot.lane.b32.xlu0 %v644_v7, %s2936_s0  ;;  %v645_v13 = vmul.f32 %v644_v7, %v569_v41 }
 0x7a9   :  { %v648_v46 = vpop.permute.xlu0 %647 }
 0x7aa   :  { %v650_v8 = vmul.f32 %v648_v46, %v644_v7 }
 0x7ac   :  { %652 = vrot.lane.b32.xlu1 %v650_v8, %s2945_s3 }
 0x81e   :  { %v653_v14 = vpop.permute.xlu1 %652 }
 0x81f   :  { %v655_v15 = vadd.f32 %v653_v14, %v645_v13 }
 0x821   :  { %2767 = vtanh.f32 %v655_v15 }
 0x82b   :  { %v2768_v16 = vpop.eup %2767 }
 0x82c   :  { %658 = vrot.lane.b32.xlu0 %v2768_v16, %s2936_s0 }
 0x89e   :  { %v659_v17 = vpop.permute.xlu0 %658 }
 0x89f   :  { %v3377_v19 = vmul.f32 %v659_v17, %v644_v7 }
 0x8a1   :  { %667 = vrot.lane.b32.xlu0 %v3377_v19, %s2936_s0  ;;  %663 = vrot.lane.b32.xlu1 %v3377_v19, %s2945_s3 }
 0x913   :  { %v668_v21 = vpop.permute.xlu0 %667  ;;  %v3383_v22 = vpop.permute.xlu1 %663 }
 0x914   :  { %670 = vst.msk [vmem:[#allocation2] sm:$0xc] %vm494_vm14, %v668_v21 }
 0x915   :  { %666 = vst.msk [vmem:[#allocation2] sm:$0x3] %vm489_vm15, %v3383_v22 }
 0x91c   :  { %v671_v23 = vld [vmem:[#allocation2] sm:$0xf] }
 0x91d   :  { %v672_v24 = vpack.c.bf16 %v671_v23, %v671_v23 }
 0x91f   :  { %2500 = vmatmul.mubr.msk.bf16.vlgmr.msra.gmra.mrb[4].mxu0 %vm408_vm8, %v672_v24 }
 0x920   :  { %2516 = vmatpush3.bf16.msra.mxu0 %v3090_v0  ;;  %2523 = vmatprep.mubr.msk.bf16.mxu0 %vm2944_vm6, %v2942_v1 }
 0x921   :  { %2517 = vmatprep.subr.bf16.mxu0 %v2942_v1 }
 0x924   :  { %2518 = vmatpush3.bf16.msra.mxu0 %v3105_v6 }
 0x925   :  { %2519 = vmatprep.subr.bf16.mxu0 %v2942_v1 }
 0x928   :  { %2520 = vmatpush3.bf16.msra.mxu0 %v3120_v10 }
 0x929   :  { %2521 = vmatprep.subr.bf16.mxu0 %v2942_v1 }
 0x92c   :  { %2522 = vmatpush3.bf16.msra.mxu0 %v3146_v12 }
 0x92d   :  { %2539 = vmatprep.subr.bf16.mxu0 %v2942_v1 }
 0x9f2   :  { %v710_v25 = vpop.f32.mrb[4].mxu0 }
 0x9f3   :  { %v721_v0 = vadd.f32 %v3303_v54, %v710_v25  ;;  %v2501_v26 = vpop.f32.mrb[5].mxu0 }
 0x9f4   :  { %v713_v27 = vpop.f32.mrb[6].mxu0  ;;  %v2801_v26 = vld [vmem:[%s3681_s4 + $0x10] sm:$0xff]  }
 0x9f5   :  { %v722_v28 = vmul.f32 2.0, %v721_v0  ;;  %v2502_v29 = vpop.f32.mrb[7].mxu0  ;;  %v2802_v27 = vld [vmem:[%s3681_s4 + $0x18] sm:$0xff]  }
 0x9f7   :  { %v723_v6 = vsel %vm3307_vm13, %v722_v28, %v721_v0 }
 0x9f8   :  { %v2247_v30 = vmul.f32 -1.442695, %v723_v6 }
 0x9fa   :  { %2769 = vpow2.f32 %v2247_v30 }
 0xa04   :  { %v2770_v31 = vpop.eup %2769 }
 0xa05   :  { %v727_v32 = vadd.f32 1.0, %v2770_v31 }
 0xa07   :  { %2771 = vrcp.f32 %v727_v32 }
 0xa11   :  { %v2772_v33 = vpop.eup %2771 }
 0xa12   :  { %v730_v34 = vmul.f32 2.0, %v2772_v33 }
 0xa14   :  { %v2248_v35 = vadd.f32 -1.0, %v730_v34 }
 0xa16   :  { %v732_v36 = vsel %vm3307_vm13, %v2248_v35, %v2772_v33 }
 0xa17   :  { %735 = vrot.lane.b32.xlu1 %v732_v36, %s2936_s0  ;;  %v733_v38 = vmul.f32 %v732_v36, %v655_v15 }
 0xa89   :  { %v736_v54 = vpop.permute.xlu1 %735 }
 0xa8a   :  { %v738_v37 = vmul.f32 %v736_v54, %v732_v36 }
 0xa8c   :  { %740 = vrot.lane.b32.xlu0 %v738_v37, %s2945_s3 }
 0xafe   :  { %v741_v39 = vpop.permute.xlu0 %740 }
 0xaff   :  { %v743_v40 = vadd.f32 %v741_v39, %v733_v38 }
 0xb01   :  { %2773 = vtanh.f32 %v743_v40 }
 0xb0b   :  { %v2774_v41 = vpop.eup %2773 }
 0xb0c   :  { %746 = vrot.lane.b32.xlu1 %v2774_v41, %s2936_s0 }
 0xb7e   :  { %v747_v9 = vpop.permute.xlu1 %746 }
 0xb7f   :  { %v3407_v42 = vmul.f32 %v747_v9, %v732_v36 }
 0xb81   :  { %755 = vrot.lane.b32.xlu1 %v3407_v42, %s2936_s0  ;;  %751 = vrot.lane.b32.xlu0 %v3407_v42, %s2945_s3 }
 0xbf3   :  { %v756_v43 = vpop.permute.xlu1 %755  ;;  %v3413_v3 = vpop.permute.xlu0 %751 }
 0xbf4   :  { %758 = vst.msk [vmem:[#allocation2] sm:$0xc] %vm494_vm14, %v756_v43 }
 0xbf5   :  { %754 = vst.msk [vmem:[#allocation2] sm:$0x3] %vm489_vm15, %v3413_v3 }
 0xbfc   :  { %v759_v45 = vld [vmem:[#allocation2] sm:$0xf] }
 0xbfd   :  { %v760_v47 = vpack.c.bf16 %v759_v45, %v759_v45 }
 0xbff   :  { %2512 = vmatmul.mubr.msk.bf16.vlgmr.msra.gmra.mrb[12].mxu1 %vm408_vm8, %v760_v47 }
 0xc00   :  { %2528 = vmatpush3.bf16.msra.mxu1 %v2799_v52  ;;  %2535 = vmatprep.mubr.msk.bf16.mxu1 %vm2944_vm6, %v2942_v1 }
 0xc01   :  { %2529 = vmatprep.subr.bf16.mxu1 %v2942_v1 }
 0xc04   :  { %2530 = vmatpush3.bf16.msra.mxu1 %v2800_v53 }
 0xc05   :  { %2531 = vmatprep.subr.bf16.mxu1 %v2942_v1 }
 0xc08   :  { %2532 = vmatpush3.bf16.msra.mxu1 %v3120_v10 }
 0xc09   :  { %2533 = vmatprep.subr.bf16.mxu1 %v2942_v1 }
 0xc0c   :  { %2534 = vmatpush3.bf16.msra.mxu1 %v3146_v12 }
 0xc0d   :  { %1324 = vmatprep.subr.bf16.mxu1 %v2943_v5 }
 0xcd2   :  { %v798_v55 = vpop.f32.mrb[12].mxu1 }
 0xcd3   :  { %v808_v57 = vadd.f32 %v3289_v48, %v798_v55  ;;  %v2513_v58 = vpop.f32.mrb[13].mxu1 }
 0xcd4   :  { %v801_v59 = vpop.f32.mrb[14].mxu1 }
 0xcd5   :  { %v809_v60 = vmul.f32 2.0, %v808_v57  ;;  %v2514_v61 = vpop.f32.mrb[15].mxu1 }
 0xcd7   :  { %v810_v62 = vsel %vm3307_vm13, %v809_v60, %v808_v57 }
 0xcd8   :  { %v2250_v63 = vmul.f32 -1.442695, %v810_v62 }
 0xcda   :  { %2775 = vpow2.f32 %v2250_v63 }
 0xce4   :  { %v2776_v2 = vpop.eup %2775 }
 0xce5   :  { %v814_v10 = vadd.f32 1.0, %v2776_v2 }
 0xce7   :  { %2777 = vrcp.f32 %v814_v10 }
 0xcf1   :  { %v2778_v4 = vpop.eup %2777 }
 0xcf2   :  { %v817_v7 = vmul.f32 2.0, %v2778_v4 }
 0xcf4   :  { %v2251_v12 = vadd.f32 -1.0, %v817_v7 }
 0xcf6   :  { %v819_v46 = vsel %vm3307_vm13, %v2251_v12, %v2778_v4 }
 0xcf7   :  { %822 = vrot.lane.b32.xlu0 %v819_v46, %s2936_s0  ;;  %v820_v13 = vmul.f32 %v819_v46, %v743_v40 }
 0xd69   :  { %v823_v48 = vpop.permute.xlu0 %822 }
 0xd6a   :  { %v825_v8 = vmul.f32 %v823_v48, %v819_v46 }
 0xd6c   :  { %827 = vrot.lane.b32.xlu1 %v825_v8, %s2945_s3 }
 0xdde   :  { %v828_v14 = vpop.permute.xlu1 %827 }
 0xddf   :  { %v830_v15 = vadd.f32 %v828_v14, %v820_v13 }
 0xde1   :  { %2779 = vtanh.f32 %v830_v15 }
 0xdeb   :  { %v2780_v16 = vpop.eup %2779 }
 0xdec   :  { %833 = vrot.lane.b32.xlu0 %v2780_v16, %s2936_s0 }
 0xe5e   :  { %v834_v17 = vpop.permute.xlu0 %833 }
 0xe5f   :  { %v836_v21 = vmul.f32 %v834_v17, %v819_v46 }
 0xe61   :  { %842 = vrot.lane.b32.xlu0 %v836_v21, %s2936_s0  ;;  %838 = vrot.lane.b32.xlu1 %v836_v21, %s2945_s3  ;;  %v1124_v55 = vrot.slane %v836_v21, 2 }
 0xed3   :  { %v843_v23 = vpop.permute.xlu0 %842  ;;  %v3443_v24 = vpop.permute.xlu1 %838 }
 0xed4   :  { %845 = vst.msk [vmem:[#allocation2] sm:$0xc] %vm494_vm14, %v843_v23 }
 0xed5   :  { %841 = vst.msk [vmem:[#allocation2] sm:$0x3] %vm489_vm15, %v3443_v24 }
 0xedc   :  { %v846_v25 = vld [vmem:[#allocation2] sm:$0xf] }
 0xedd   :  { %v847_v0 = vpack.c.bf16 %v846_v25, %v846_v25 }
 0xedf   :  { %2524 = vmatmul.mubr.msk.bf16.vlgmr.msra.gmra.mrb[8].mxu0 %vm408_vm8, %v847_v0 }
 0xee0   :  { %2540 = vmatpush3.bf16.msra.mxu0 %v2799_v52  ;;  %2547 = vmatprep.mubr.msk.bf16.mxu0 %vm2944_vm6, %v2942_v1 }
 0xee1   :  { %2541 = vmatprep.subr.bf16.mxu0 %v2942_v1 }
 0xee4   :  { %2542 = vmatpush3.bf16.msra.mxu0 %v2800_v53 }
 0xee5   :  { %2543 = vmatprep.subr.bf16.mxu0 %v2942_v1 }
 0xee8   :  { %2544 = vmatpush3.bf16.msra.mxu0 %v2801_v26 }
 0xee9   :  { %2545 = vmatprep.subr.bf16.mxu0 %v2942_v1 }
 0xeec   :  { %2546 = vmatpush3.bf16.msra.mxu0 %v2802_v27 }
 0xeed   :  { %2551 = vmatprep.subr.bf16.mxu0 %v2942_v1 }
 0xfb2   :  { %v885_v28 = vpop.f32.mrb[8].mxu0 }
 0xfb3   :  { %v897_v29 = vadd.f32 %v3292_v49, %v885_v28  ;;  %v2525_v6 = vpop.f32.mrb[9].mxu0 }
 0xfb4   :  { %v888_v30 = vpop.f32.mrb[10].mxu0 }
 0xfb5   :  { %v898_v31 = vmul.f32 2.0, %v897_v29  ;;  %v2526_v32 = vpop.f32.mrb[11].mxu0 }
 0xfb7   :  { %v899_v33 = vsel %vm3307_vm13, %v898_v31, %v897_v29  ;;  %v1129_v29 = vrot.slane %v3407_v42, 2 }
 0xfb8   :  { %v2253_v34 = vmul.f32 -1.442695, %v899_v33 }
 0xfba   :  { %2781 = vpow2.f32 %v2253_v34 }
 0xfc4   :  { %v2782_v35 = vpop.eup %2781 }
 0xfc5   :  { %v903_v36 = vadd.f32 1.0, %v2782_v35 }
 0xfc7   :  { %2783 = vrcp.f32 %v903_v36 }
 0xfd1   :  { %v2784_v54 = vpop.eup %2783 }
 0xfd2   :  { %v906_v37 = vmul.f32 2.0, %v2784_v54 }
 0xfd4   :  { %v2254_v38 = vadd.f32 -1.0, %v906_v37 }
 0xfd6   :  { %v908_v39 = vsel %vm3307_vm13, %v2254_v38, %v2784_v54 }
 0xfd7   :  { %911 = vrot.lane.b32.xlu1 %v908_v39, %s2936_s0  ;;  %v909_v41 = vmul.f32 %v908_v39, %v830_v15 }
0x1049   :  { %v912_v49 = vpop.permute.xlu1 %911 }
0x104a   :  { %v914_v40 = vmul.f32 %v912_v49, %v908_v39 }
0x104c   :  { %916 = vrot.lane.b32.xlu0 %v914_v40, %s2945_s3 }
0x10be   :  { %v917_v9 = vpop.permute.xlu0 %916 }
0x10bf   :  { %v919_v43 = vadd.f32 %v917_v9, %v909_v41 }
0x10c1   :  { %2785 = vtanh.f32 %v919_v43 }
0x10cb   :  { %v2786_v45 = vpop.eup %2785 }
0x10cc   :  { %922 = vrot.lane.b32.xlu1 %v2786_v45, %s2936_s0 }
0x113e   :  { %v923_v47 = vpop.permute.xlu1 %922 }
0x113f   :  { %v925_v52 = vmul.f32 %v923_v47, %v908_v39 }
0x1141   :  { %931 = vrot.lane.b32.xlu1 %v925_v52, %s2936_s0  ;;  %927 = vrot.lane.b32.xlu0 %v925_v52, %s2945_s3  ;;  %v1119_v53 = vrot.slane %v925_v52, 2  ;;  %v1139_v52 = vrot.slane %v3347_v11, 2  ;;  %v1134_v11 = vrot.slane %v3377_v19, 2  ;;  %v2684_v19 = vld [vmem:[#allocation7 + $0x28] sm:$0xff]  }
0x1143   :  { %v3471_v57 = vpack.i.bf16 %v1124_v55, %v1119_v53 }
0x11b3   :  { %v932_v58 = vpop.permute.xlu1 %931  ;;  %v3473_v59 = vpop.permute.xlu0 %927 }
0x11b4   :  { %934 = vst.msk [vmem:[#allocation2] sm:$0xc] %vm494_vm14, %v932_v58 }
0x11b5   :  { %930 = vst.msk [vmem:[#allocation2] sm:$0x3] %vm489_vm15, %v3473_v59 }
0x11bc   :  { %v935_v60 = vld [vmem:[#allocation2] sm:$0xf] }
0x11bd   :  { %v936_v61 = vpack.c.bf16 %v935_v60, %v935_v60 }
0x11bf   :  { %2536 = vmatmul.mubr.msk.bf16.vlgmr.msra.gmra.mrb[16].mxu1 %vm408_vm8, %v936_v61  ;;  %v1144_v61 = vrot.slane %v3318_v18, 2  ;;  %v2680_v18 = vld [vmem:[#allocation7 + $0x8] sm:$0xff]  }
0x1292   :  { %v974_v62 = vpop.f32.mrb[16].mxu1 }
0x1293   :  { %v983_v63 = vadd.f32 %v3295_v50, %v974_v62  ;;  %v2537_v2 = vpop.f32.mrb[17].mxu1 }
0x1294   :  { %v977_v10 = vpop.f32.mrb[18].mxu1  ;;  %v2679_v2 = vld [vmem:[#allocation7] sm:$0xff]  }
0x1295   :  { %v984_v4 = vmul.f32 2.0, %v983_v63  ;;  %v2538_v7 = vpop.f32.mrb[19].mxu1  ;;  %1325 = vmatpush1.bf16.msra.mxu1 %v2679_v2  ;;  %v2682_v10 = vld [vmem:[#allocation7 + $0x18] sm:$0xff]  }
0x1296   :  { %1326 = vmatprep.subr.bf16.mxu1 %v2943_v5  ;;  %v2685_v7 = vld [vmem:[#allocation7 + $0x30] sm:$0xff]  }
0x1297   :  { %v985_v12 = vsel %vm3307_vm13, %v984_v4, %v983_v63  ;;  %v2683_v4 = vld [vmem:[#allocation7 + $0x20] sm:$0xff]  }
0x1298   :  { %v2256_v46 = vmul.f32 -1.442695, %v985_v12  ;;  %v2686_v12 = vld [vmem:[#allocation7 + $0x38] sm:$0xff]  }
0x1299   :  { %1327 = vmatpush1.bf16.msra.mxu1 %v2680_v18 }
0x129a   :  { %2787 = vpow2.f32 %v2256_v46  ;;  %1328 = vmatprep.subr.bf16.mxu1 %v2943_v5  ;;  %v2687_v46 = vld [vmem:[#allocation7 + $0x40] sm:$0xff]  }
0x12a4   :  { %v2788_v48 = vpop.eup %2787 }
0x12a5   :  { %v989_v8 = vadd.f32 1.0, %v2788_v48  ;;  %v2688_v48 = vld [vmem:[#allocation7 + $0x48] sm:$0xff]  }
0x12a7   :  { %2789 = vrcp.f32 %v989_v8 }
0x12b1   :  { %v2790_v13 = vpop.eup %2789 }
0x12b2   :  { %v992_v14 = vmul.f32 2.0, %v2790_v13 }
0x12b4   :  { %v2257_v15 = vadd.f32 -1.0, %v992_v14  ;;  %v2689_v14 = vld [vmem:[#allocation7 + $0x50] sm:$0xff]  }
0x12b6   :  { %v994_v16 = vsel %vm3307_vm13, %v2257_v15, %v2790_v13 }
0x12b7   :  { %997 = vrot.lane.b32.xlu0 %v994_v16, %s2936_s0  ;;  %v995_v21 = vmul.f32 %v994_v16, %v919_v43 }
0x1329   :  { %v998_v50 = vpop.permute.xlu0 %997 }
0x132a   :  { %v1000_v17 = vmul.f32 %v998_v50, %v994_v16 }
0x132c   :  { %1002 = vrot.lane.b32.xlu1 %v1000_v17, %s2945_s3 }
0x139e   :  { %v1003_v23 = vpop.permute.xlu1 %1002 }
0x139f   :  { %v1005_v25 = vadd.f32 %v1003_v23, %v995_v21  ;;  %v2690_v21 = vld [vmem:[#allocation7 + $0x58] sm:$0xff]  }
0x13a1   :  { %2791 = vtanh.f32 %v1005_v25 }
0x13ab   :  { %v2792_v0 = vpop.eup %2791 }
0x13ac   :  { %1008 = vrot.lane.b32.xlu0 %v2792_v0, %s2936_s0 }
0x141e   :  { %v1009_v26 = vpop.permute.xlu0 %1008 }
0x141f   :  { %v1011_v27 = vmul.f32 %v1009_v26, %v994_v16 }
0x1421   :  { %1017 = vrot.lane.b32.xlu0 %v1011_v27, %s2936_s0  ;;  %1013 = vrot.lane.b32.xlu1 %v1011_v27, %s2945_s3  ;;  %v1114_v28 = vrot.slane %v1011_v27, 2 }
0x1423   :  { %v2649_v6 = vpack.i.bf16 %v1129_v29, %v1114_v28 }
0x1493   :  { %v1018_v30 = vpop.permute.xlu0 %1017  ;;  %v3490_v31 = vpop.permute.xlu1 %1013 }
0x1494   :  { %1020 = vst.msk [vmem:[#allocation2] sm:$0xc] %vm494_vm14, %v1018_v30  ;;  %v2711_v30 = vld [vmem:[#allocation11] sm:$0xff]  }
0x1495   :  { %1016 = vst.msk [vmem:[#allocation2] sm:$0x3] %vm489_vm15, %v3490_v31 }
0x149c   :  { %v1021_v32 = vld [vmem:[#allocation2] sm:$0xf] }
0x149d   :  { %v1022_v33 = vpack.c.bf16 %v1021_v32, %v1021_v32  ;;  %v2712_v32 = vld [vmem:[#allocation11 + $0x8] sm:$0xff]  }
0x149f   :  { %2548 = vmatmul.mubr.msk.bf16.vlgmr.msra.gmra.mrb[12].mxu0 %vm408_vm8, %v1022_v33 }
0x14a0   :  { %2567 = vmatprep.mubr.msk.bf16.mxu0 %vm2944_vm6, %v2942_v1  ;;  %2552 = vmatpush3.bf16.msra.mxu0 %v2711_v30  ;;  %v2702_v30 = vld [vmem:[#allocation10 + $0x28] sm:$0xff]  }
0x14a1   :  { %2553 = vmatprep.subr.bf16.mxu0 %v2942_v1 }
0x14a4   :  { %2554 = vmatpush3.bf16.msra.mxu0 %v2712_v32  ;;  %v2704_v32 = vld [vmem:[#allocation10 + $0x30] sm:$0xff]  }
0x14a5   :  { %2555 = vmatprep.subr.bf16.mxu0 %v2942_v1 }
0x1572   :  { %v1060_v34 = vpop.f32.mrb[12].mxu0 }
0x1573   :  { %v1071_v35 = vadd.f32 %v3298_v51, %v1060_v34  ;;  %v2549_v42 = vpop.f32.mrb[13].mxu0 }
0x1574   :  { %v1063_v36 = vpop.f32.mrb[14].mxu0 }
0x1575   :  { %v1072_v54 = vmul.f32 2.0, %v1071_v35  ;;  %v2550_v37 = vpop.f32.mrb[15].mxu0 }
0x1576   :  { %v2713_v37 = vld [vmem:[#allocation11 + $0x10] sm:$0xff]  }
0x1577   :  { %v1073_v38 = vsel %vm3307_vm13, %v1072_v54, %v1071_v35  ;;  %2556 = vmatpush3.bf16.msra.mxu0 %v2713_v37 }
0x1578   :  { %v2259_v39 = vmul.f32 -1.442695, %v1073_v38  ;;  %2557 = vmatprep.subr.bf16.mxu0 %v2942_v1 }
0x157a   :  { %2793 = vpow2.f32 %v2259_v39 }
0x1584   :  { %v2794_v49 = vpop.eup %2793 }
0x1585   :  { %v1077_v40 = vadd.f32 1.0, %v2794_v49 }
0x1587   :  { %2795 = vrcp.f32 %v1077_v40 }
0x1591   :  { %v2796_v41 = vpop.eup %2795 }
0x1592   :  { %v1080_v9 = vmul.f32 2.0, %v2796_v41 }
0x1594   :  { %v2260_v43 = vadd.f32 -1.0, %v1080_v9 }
0x1596   :  { %v1082_v45 = vsel %vm3307_vm13, %v2260_v43, %v2796_v41 }
0x1597   :  { %1085 = vrot.lane.b32.xlu1 %v1082_v45, %s2936_s0  ;;  %v1083_v53 = vmul.f32 %v1082_v45, %v1005_v25 }
0x1609   :  { %v1086_v51 = vpop.permute.xlu1 %1085 }
0x160a   :  { %v1088_v47 = vmul.f32 %v1086_v51, %v1082_v45 }
0x160c   :  { %1090 = vrot.lane.b32.xlu0 %v1088_v47, %s2945_s3 }
0x1610   :  { %2645 = vrot.lane.b32.xlu0 %v3471_v57, %s2936_s0 }
0x1614   :  { %1140 = vrot.lane.b32.xlu0 %v1139_v52, %s2936_s0 }
0x167e   :  { %v1091_v55 = vpop.permute.xlu0 %1090 }
0x167f   :  { %v1093_v58 = vadd.f32 %v1091_v55, %v1083_v53 }
0x1681   :  { %2797 = vtanh.f32 %v1093_v58 }
0x1682   :  { %v2646_v60 = vpop.permute.xlu0 %2645 }
0x1683   :  { %v2648_v56 = vunpack.i.h.bf16 %v2646_v60  ;;  %v2647_v8 = vunpack.i.l.bf16 %v2646_v60  ;;  %v2714_v60 = vld [vmem:[#allocation11 + $0x18] sm:$0xff]  }
0x1684   :  { %2558 = vmatpush3.bf16.msra.mxu0 %v2714_v60 }
0x1685   :  { %v3512_v62 = vsel %vm320_vm10, %v3413_v3, %v2648_v56  ;;  %v2681_v3 = vld [vmem:[#allocation7 + $0x10] sm:$0xff]   ;;  %v1123_v17 = vsel %vm320_vm10, %v3383_v22, %v2647_v8  ;;  %2559 = vmatprep.subr.bf16.mxu0 %v2942_v1  ;;  %v2692_v8 = vld [vmem:[#allocation10] sm:$0xff]  }
0x1686   :  { %v2654_v63 = vpack.i.bf16 %v3512_v62, %v1144_v61  ;;  %1329 = vmatpush1.bf16.msra.mxu1 %v2681_v3  ;;  %v1141_v26 = vpop.permute.xlu0 %1140  ;;  %v1189_v42 = vrot.slane %v3512_v62, 6 }
0x1687   :  { %1330 = vmatprep.subr.bf16.mxu1 %v2943_v5  ;;  %v3543_v22 = vsel %vm320_vm10, %v3490_v31, %v1141_v26  ;;  %v2696_v26 = vld [vmem:[#allocation10 + $0x10] sm:$0xff]  }
0x1688   :  { %2655 = vrot.lane.b32.xlu0 %v2654_v63, %s2936_s0  ;;  %v1209_v47 = vsel %vm264_vm2, %v1123_v17, %v1189_v42 }
0x168a   :  { %1331 = vmatpush1.bf16.msra.mxu1 %v2682_v10 }
0x168b   :  { %v2798_v57 = vpop.eup %2797  ;;  %1332 = vmatprep.subr.bf16.mxu1 %v2943_v5 }
0x168c   :  { %1096 = vrot.lane.b32.xlu1 %v2798_v57, %s2936_s0 }
0x168e   :  { %1333 = vmatpush1.bf16.msra.mxu1 %v2683_v4 }
0x168f   :  { %1334 = vmatprep.subr.bf16.mxu1 %v2943_v5 }
0x1690   :  { %2650 = vrot.lane.b32.xlu1 %v2649_v6, %s2936_s0 }
0x1692   :  { %1335 = vmatpush1.bf16.msra.mxu1 %v2684_v19 }
0x1693   :  { %1336 = vmatprep.subr.bf16.mxu1 %v2943_v5 }
0x1694   :  { %1135 = vrot.lane.b32.xlu1 %v1134_v11, %s2936_s0 }
0x1696   :  { %1337 = vmatpush1.bf16.msra.mxu1 %v2685_v7 }
0x1697   :  { %1338 = vmatprep.subr.bf16.mxu1 %v2943_v5 }
0x169a   :  { %1339 = vmatpush1.bf16.msra.mxu1 %v2686_v12 }
0x169b   :  { %1340 = vmatprep.subr.bf16.mxu1 %v2943_v5 }
0x169e   :  { %1341 = vmatpush1.bf16.msra.mxu1 %v2687_v46 }
0x169f   :  { %1342 = vmatprep.subr.bf16.mxu1 %v2943_v5 }
0x16a2   :  { %1343 = vmatpush1.bf16.msra.mxu1 %v2688_v48 }
0x16a3   :  { %1344 = vmatprep.subr.bf16.mxu1 %v2943_v5 }
0x16a6   :  { %1345 = vmatpush1.bf16.msra.mxu1 %v2689_v14 }
0x16a7   :  { %1346 = vmatprep.subr.bf16.mxu1 %v2943_v5  ;;  %v2691_v5 = vld [vmem:[#allocation10 + $0x40] sm:$0xff]  }
0x16aa   :  { %1347 = vmatpush1.bf16.msra.mxu1 %v2690_v21 }
0x16ab   :  { %2419 = vmatprep.subr.bf16.mxu1 %v2691_v5  ;;  %v2698_v5 = vld [vmem:[#allocation10 + $0x18] sm:$0xff]  }
0x16fe   :  { %v1097_v13 = vpop.permute.xlu1 %1096 }
0x16ff   :  { %v1099_v15 = vmul.f32 %v1097_v13, %v1082_v45 }
0x1701   :  { %v1109_v16 = vrot.slane %v1099_v15, 2 }
0x1702   :  { %v2651_v50 = vpop.permute.xlu1 %2650 }
0x1703   :  { %v2653_v23 = vunpack.i.h.bf16 %v2651_v50  ;;  %v2652_v25 = vunpack.i.l.bf16 %v2651_v50  ;;  %v2664_v0 = vpack.i.bf16 %v1109_v16, %v1123_v17 }
0x1705   :  { %2665 = vrot.lane.b32.xlu0 %v2664_v0, %s2936_s0  ;;  %v1118_v27 = vsel %vm320_vm10, %v3353_v44, %v2652_v25  ;;  %v3538_v28 = vsel %vm320_vm10, %v3443_v24, %v2653_v23  ;;  %v2656_v24 = vpop.permute.xlu0 %2655  ;;  %v2694_v25 = vld [vmem:[#allocation10 + $0x8] sm:$0xff]   ;;  %v2695_v0 = vld [vmem:[#allocation10 + $0x50] sm:$0xff]  }
0x1706   :  { %v2659_v29 = vpack.i.bf16 %v3538_v28, %v1118_v27  ;;  %v1136_v6 = vpop.permute.xlu1 %1135  ;;  %v2658_v31 = vunpack.i.h.bf16 %v2656_v24  ;;  %v1194_v38 = vrot.slane %v3538_v28, 4  ;;  %v2657_v43 = vunpack.i.l.bf16 %v2656_v24  ;;  %v2701_v24 = vld [vmem:[#allocation10 + $0x68] sm:$0xff]  }
0x1707   :  { %v3551_v44 = vsel %vm320_vm10, %v3473_v59, %v1136_v6  ;;  %v2700_v6 = vld [vmem:[#allocation10 + $0x20] sm:$0xff]  }
0x1708   :  { %2660 = vrot.lane.b32.xlu1 %v2659_v29, %s2936_s0  ;;  %v1171_v59 = vsel %vm408_vm8, %v1123_v17, %v2658_v31  ;;  %v1199_v53 = vrot.slane %v3551_v44, 2  ;;  %v2699_v29 = vld [vmem:[#allocation10 + $0x60] sm:$0xff]   ;;  %v2703_v31 = vld [vmem:[#allocation10 + $0x70] sm:$0xff]  }
0x1709   :  { %1183 = vrot.lane.b32.xlu0 %v3543_v22, %s2936_s0  ;;  %v1193_v52 = vrot.slane %v1171_v59, 4 }
0x170c   :  { %1101 = vrot.lane.b32.xlu1 %v1099_v15, %s2945_s3 }
0x1710   :  { %1178 = vrot.lane.b32.xlu1 %v3551_v44, %s2936_s0 }
0x1714   :  { %1105 = vrot.lane.b32.xlu1 %v1099_v15, %s2936_s0  ;;  %v2693_v15 = vld [vmem:[#allocation10 + $0x48] sm:$0xff]  }
0x1777   :  { %v2666_v33 = vpop.permute.xlu0 %2665 }
0x1778   :  { %v2668_v34 = vunpack.i.h.bf16 %v2666_v33  ;;  %v2667_v35 = vunpack.i.l.bf16 %v2666_v33  ;;  %v2705_v33 = vld [vmem:[#allocation10 + $0x78] sm:$0xff]  }
0x177a   :  { %v1166_v36 = vsel %vm408_vm8, %v1118_v27, %v2667_v35  ;;  %v2661_v54 = vpop.permute.xlu1 %2660  ;;  %v1113_v41 = vsel %vm320_vm10, %v3324_v20, %v2668_v34  ;;  %v2697_v27 = vld [vmem:[#allocation10 + $0x58] sm:$0xff]   ;;  %v2707_v35 = vld [vmem:[#allocation10 + $0x80] sm:$0xff]  }
0x177b   :  { %v1188_v39 = vrot.slane %v1166_v36, 6  ;;  %v2663_v49 = vunpack.i.h.bf16 %v2661_v54  ;;  %v2662_v40 = vunpack.i.l.bf16 %v2661_v54  ;;  %v1184_v9 = vpop.permute.xlu0 %1183  ;;  %v2706_v34 = vld [vmem:[#allocation10 + $0x38] sm:$0xff]   ;;  %v1799_v36 = vrot.slane %v3551_v44, 6  ;;  %v2709_v54 = vld [vmem:[#allocation10 + $0x90] sm:$0xff]  }
0x177c   :  { %v1186_v20 = vsel %vm408_vm8, %v3551_v44, %v1184_v9  ;;  %v2715_v9 = vld [vmem:[#allocation11 + $0x20] sm:$0xff]  }
0x177d   :  { %v1176_v45 = vsel %vm408_vm8, %v3512_v62, %v2663_v49  ;;  %v1161_v51 = vsel %vm408_vm8, %v1113_v41, %v2662_v40  ;;  %v1211_v62 = vsel %vm268_vm4, %v1209_v47, %v1194_v38  ;;  %v1204_v2 = vrot.slane %v1186_v20, 6  ;;  %v2710_v49 = vld [vmem:[#allocation10 + $0x98] sm:$0xff]   ;;  %2560 = vmatpush3.bf16.msra.mxu0 %v2715_v9 }
0x177e   :  { %v1208_v55 = vsel %vm264_vm2, %v1161_v51, %v1188_v39  ;;  %v1102_v58 = vpop.permute.xlu1 %1101  ;;  %v1198_v56 = vrot.slane %v1176_v45, 2  ;;  %v1492_v11 = vrot.slane %v1176_v45, 6  ;;  %v1213_v3 = vsel %vm272_vm7, %v1211_v62, %v1199_v53  ;;  %2561 = vmatprep.subr.bf16.mxu0 %v2942_v1  ;;  %v2718_v45 = vld [vmem:[#allocation11 + $0x38] sm:$0xff]   ;;  %v2719_v51 = vld [vmem:[#allocation8 + $0x40] sm:$0xff]  }
0x177f   :  { %1104 = vst.msk [vmem:[#allocation2] sm:$0x3] %vm489_vm15, %v1102_v58  ;;  %v3574_v61 = vsel %vm320_vm10, %v1102_v58, %v2657_v43  ;;  %v1210_v57 = vsel %vm268_vm4, %v1208_v55, %v1193_v52  ;;  %v1497_v13 = vrot.slane %v1186_v20, 2  ;;  %v1805_v37 = vsel %vm264_vm2, %v3538_v28, %v1799_v36  ;;  %v2717_v43 = vld [vmem:[#allocation11 + $0x30] sm:$0xff]   ;;  %v2262_v47 = vld [vmem:[%s3685_s8] ss:$0 sm:$0xff] }
0x1780   :  { %1488 = vrot.lane.b32.xlu0 %v3574_v61, %s2936_s0  ;;  %v1205_v63 = vrot.slane %v3574_v61, 6  ;;  %v3590_v19 = vsel %vm272_vm7, %v1210_v57, %v1198_v56  ;;  %v1499_v16 = vsel %vm264_vm2, %v1171_v59, %v1492_v11  ;;  %v2708_v59 = vld [vmem:[#allocation10 + $0x88] sm:$0xff]   ;;  %v1803_v38 = vrot.slane %v3574_v61, 2  ;;  %v2284_v9 = vld [vmem:[%s3686_s9] ss:$0 sm:$0xff] }
0x1781   :  { %v1808_v42 = vpack.c.bf16 %v3590_v19, %v3590_v19  ;;  %v1801_v39 = vrot.slane %v3543_v22, 4 }
0x1782   :  { %v1179_v18 = vpop.permute.xlu1 %1178  ;;  %v1215_v10 = vsel %vm264_vm2, %v3543_v22, %v1205_v63 }
0x1783   :  { %v3587_v4 = vsel %vm408_vm8, %v3538_v28, %v1179_v18  ;;  %v1217_v7 = vpack.c.bf16 %v1215_v10, %v1213_v3  ;;  %v1806_v40 = vsel %vm268_vm4, %v1805_v37, %v1801_v39  ;;  %v2716_v28 = vld [vmem:[#allocation11 + $0x28] sm:$0xff]  }
0x1784   :  { %v1214_v12 = vsel %vm264_vm2, %v3587_v4, %v1204_v2  ;;  %v1495_v46 = vrot.slane %v3587_v4, 4  ;;  %v1502_v48 = vpack.c.bf16 %v3587_v4, %v3590_v19  ;;  %v1807_v41 = vsel %vm272_vm7, %v1806_v40, %v1803_v38  ;;  %2562 = vmatpush3.bf16.msra.mxu0 %v2716_v28  ;;  %v2736_v39 = vld [vmem:[#allocation11 + $0x48] sm:$0xff]   ;;  %v2738_v40 = vld [vmem:[#allocation11 + $0x58] sm:$0xff]   ;;  %v2739_v4 = vld [vmem:[#allocation11 + $0x60] sm:$0xff]  }
0x1785   :  { %v1216_v14 = vpack.c.bf16 %v1214_v12, %v3590_v19  ;;  %2275 = vmatprep.mubr.msk.bf16.mxu1 %vm408_vm8, %v1217_v7  ;;  %v1810_v44 = vpack.c.bf16 %v1807_v41, %v1807_v41  ;;  %2563 = vmatprep.subr.bf16.mxu0 %v2942_v1  ;;  %v2740_v19 = vld [vmem:[#allocation11 + $0x68] sm:$0xff]   ;;  %v2742_v41 = vld [vmem:[#allocation11 + $0x78] sm:$0xff]  }
0x1786   :  { %v1106_v50 = vpop.permute.xlu1 %1105  ;;  %v1500_v17 = vsel %vm268_vm4, %v1499_v16, %v1495_v46  ;;  %v2722_v16 = vld [vmem:[#allocation8 + $0x8] sm:$0xff]  }
0x1787   :  { %1108 = vst.msk [vmem:[#allocation2] sm:$0xc] %vm494_vm14, %v1106_v50  ;;  %1357 = vmatmul.mubr.bf16.vlgmr.msra.gmra.mrb[20].mxu1 %v1216_v14  ;;  %v3604_v21 = vsel %vm272_vm7, %v1500_v17, %v1497_v13  ;;  %v2721_v14 = vld [vmem:[#allocation8 + $0x48] sm:$0xff]   ;;  %v2723_v50 = vld [vmem:[#allocation8 + $0x50] sm:$0xff]  }
0x1788   :  { %2420 = vmatpush3.bf16.msra.mxu1 %v2692_v8  ;;  %v1809_v23 = vpack.c.bf16 %v3604_v21, %v3604_v21  ;;  %2564 = vmatpush3.bf16.msra.mxu0 %v2717_v43  ;;  %v2720_v8 = vld [vmem:[#allocation8] sm:$0xff]   ;;  %v2724_v17 = vld [vmem:[#allocation8 + $0x10] sm:$0xff]  }
0x1789   :  { %2421 = vmatprep.subr.bf16.mxu1 %v2693_v15  ;;  %2565 = vmatprep.subr.bf16.mxu0 %v2942_v1 }
0x178a   :  { %2013 = vmatprep.mubr.bf16.mxu1 %v1809_v23  ;;  %v2725_v23 = vld [vmem:[#allocation8 + $0x58] sm:$0xff]  }
0x178c   :  { %2422 = vmatpush3.bf16.msra.mxu1 %v2694_v25  ;;  %2566 = vmatpush3.bf16.msra.mxu0 %v2718_v45  ;;  %v2726_v25 = vld [vmem:[#allocation8 + $0x18] sm:$0xff]  }
0x178d   :  { %2423 = vmatprep.subr.bf16.mxu1 %v2695_v0  ;;  %2388 = vmatprep.subr.bf16.mxu0 %v2719_v51 }
0x1790   :  { %2424 = vmatpush3.bf16.msra.mxu1 %v2696_v26  ;;  %v2728_v26 = vld [vmem:[#allocation8 + $0x20] sm:$0xff]  }
0x1791   :  { %2425 = vmatprep.subr.bf16.mxu1 %v2697_v27 }
0x1794   :  { %2426 = vmatpush3.bf16.msra.mxu1 %v2698_v5 }
0x1795   :  { %2427 = vmatprep.subr.bf16.mxu1 %v2699_v29 }
0x1798   :  { %2428 = vmatpush3.bf16.msra.mxu1 %v2700_v6 }
0x1799   :  { %2429 = vmatprep.subr.bf16.mxu1 %v2701_v24  ;;  %v2730_v24 = vld [vmem:[#allocation8 + $0x28] sm:$0xff]  }
0x179c   :  { %2430 = vmatpush3.bf16.msra.mxu1 %v2702_v30  ;;  %v2731_v30 = vld [vmem:[#allocation8 + $0x70] sm:$0xff]  }
0x179d   :  { %2431 = vmatprep.subr.bf16.mxu1 %v2703_v31  ;;  %v2732_v31 = vld [vmem:[#allocation8 + $0x30] sm:$0xff]  }
0x17a0   :  { %2432 = vmatpush3.bf16.msra.mxu1 %v2704_v32  ;;  %v2733_v32 = vld [vmem:[#allocation8 + $0x78] sm:$0xff]  }
0x17a1   :  { %2433 = vmatprep.subr.bf16.mxu1 %v2705_v33  ;;  %v2734_v33 = vld [vmem:[#allocation8 + $0x38] sm:$0xff]  }
0x17a4   :  { %2434 = vmatpush3.bf16.msra.mxu1 %v2706_v34  ;;  %v2309_v34 = vld [vmem:[%s3687_s10] ss:$0 sm:$0xff] }
0x17a5   :  { %2591 = vmatprep.subr.bf16.mxu1 %v2942_v1 }
0x17a7   :  { %2014 = vmatmul.mubr.bf16.vlgmr.msra.gmra.mrb[24].mxu1 %v1808_v42 }
0x17a8   :  { %2592 = vmatpush3.bf16.msra.mxu1 %v2707_v35  ;;  %2599 = vmatprep.mubr.msk.bf16.mxu1 %vm2944_vm6, %v2942_v1 }
0x17a9   :  { %2593 = vmatprep.subr.bf16.mxu1 %v2942_v1 }
0x17ac   :  { %2594 = vmatpush3.bf16.msra.mxu1 %v2708_v59  ;;  %v2735_v59 = vld [vmem:[#allocation11 + $0x40] sm:$0xff]  }
0x17ad   :  { %2595 = vmatprep.subr.bf16.mxu1 %v2942_v1 }
0x17b0   :  { %2596 = vmatpush3.bf16.msra.mxu1 %v2709_v54 }
0x17b1   :  { %2597 = vmatprep.subr.bf16.mxu1 %v2942_v1 }
0x17b4   :  { %2598 = vmatpush3.bf16.msra.mxu1 %v2710_v49  ;;  %v2737_v49 = vld [vmem:[#allocation11 + $0x50] sm:$0xff]  }
0x17b7   :  { %2600 = vmatmul.mubr.msk.bf16.vlgmr.msra.gmra.mrb[28].mxu1 %vm408_vm8, %v1810_v44 }
0x17f2   :  { %v1489_v3 = vpop.permute.xlu0 %1488 }
0x17f3   :  { %v1491_v12 = vsel %vm408_vm8, %v3543_v22, %v1489_v3  ;;  %v2727_v22 = vld [vmem:[#allocation8 + $0x60] sm:$0xff]   ;;  %v2745_v3 = vld [vmem:[#allocation11 + $0x90] sm:$0xff]  }
0x17f4   :  { %v1503_v15 = vpack.c.bf16 %v1491_v12, %v3604_v21  ;;  %v2729_v21 = vld [vmem:[#allocation8 + $0x68] sm:$0xff]   ;;  %v2747_v12 = vld [vmem:[#allocation11 + $0xa0] sm:$0xff]  }
0x185a   :  { %v1358_v52 = vpop.f32.mrb[20].mxu1 }
0x185b   :  { %v1359_v53 = vadd.f32 %v2262_v47, %v1358_v52  ;;  %v1360_v55 = vpop.f32.mrb[21].mxu1 }
0x185c   :  { %v1361_v58 = vpop.f32.mrb[22].mxu1 }
0x185d   :  { %v1365_v60 = vmax.f32 %v1359_v53, 0.0  ;;  %v1363_v56 = vpop.f32.mrb[23].mxu1  ;;  %v1362_v61 = vadd.f32 %v2262_v47, %v1361_v58 }
0x185f   :  { %v1368_v20 = vrot.slane %v1365_v60, 2  ;;  %v1371_v63 = vrot.slane %v1365_v60, 4  ;;  %v1366_v57 = vmax.f32 %v1362_v61, 0.0  ;;  %v1374_v2 = vrot.slane %v1365_v60, 6 }
0x1861   :  { %v1370_v62 = vmax.f32 %v1365_v60, %v1368_v20  ;;  %v1379_v7 = vrot.slane %v1366_v57, 2 }
0x1863   :  { %v1373_v11 = vmax.f32 %v1370_v62, %v1371_v63 }
0x1865   :  { %v1376_v18 = vmax.f32 %v1373_v11, %v1374_v2  ;;  %v2743_v11 = vld [vmem:[#allocation11 + $0x80] sm:$0xff]  }
0x1867   :  { %v1377_v10 = vmax.f32 %v1376_v18, %v1366_v57  ;;  %v2744_v18 = vld [vmem:[#allocation11 + $0x88] sm:$0xff]  }
0x1869   :  { %v1381_v46 = vmax.f32 %v1377_v10, %v1379_v7  ;;  %v2746_v10 = vld [vmem:[#allocation11 + $0x98] sm:$0xff]  }
0x186b   :  { %v1382_v13 = vpack.c.bf16 %v1381_v46, %v1381_v46 }
0x186d   :  { %2568 = vmatmul.mubr.bf16.vlgmr.msra.gmra.mrb[16].mxu0 %v1382_v13 }
0x186e   :  { %2389 = vmatpush3.bf16.msra.mxu0 %v2720_v8  ;;  %1671 = vmatprep.mubr.bf16.mxu0 %v1503_v15  ;;  %v2748_v8 = vld [vmem:[#allocation11 + $0xa8] sm:$0xff]   ;;  %v2749_v15 = vld [vmem:[#allocation11 + $0xb0] sm:$0xff]  }
0x186f   :  { %2390 = vmatprep.subr.bf16.mxu0 %v2721_v14 }
0x1872   :  { %2391 = vmatpush3.bf16.msra.mxu0 %v2722_v16 }
0x1873   :  { %2392 = vmatprep.subr.bf16.mxu0 %v2723_v50 }
0x1876   :  { %2393 = vmatpush3.bf16.msra.mxu0 %v2724_v17  ;;  %v2750_v17 = vld [vmem:[#allocation11 + $0xb8] sm:$0xff]  }
0x1877   :  { %2394 = vmatprep.subr.bf16.mxu0 %v2725_v23 }
0x187a   :  { %2395 = vmatpush3.bf16.msra.mxu0 %v2726_v25  ;;  %v2435_v0 = vpop.f32.mrb[24].mxu1 }
0x187b   :  { %v2436_v27 = vpop.f32.mrb[25].mxu1  ;;  %2396 = vmatprep.subr.bf16.mxu0 %v2727_v22  ;;  %v2261_v22 = vld [vmem:[%s3689_s12] ss:$0 sm:$0xff] }
0x187c   :  { %v2437_v5 = vadd.f32 %v2436_v27, %v2435_v0  ;;  %v2438_v29 = vpop.f32.mrb[26].mxu1 }
0x187d   :  { %v2439_v6 = vpop.f32.mrb[27].mxu1 }
0x187e   :  { %2397 = vmatpush3.bf16.msra.mxu0 %v2728_v26  ;;  %v2016_v35 = vadd.f32 %v2437_v5, %v2309_v34 }
0x187f   :  { %2398 = vmatprep.subr.bf16.mxu0 %v2729_v21 }
0x1882   :  { %2399 = vmatpush3.bf16.msra.mxu0 %v2730_v24 }
0x1883   :  { %2400 = vmatprep.subr.bf16.mxu0 %v2731_v30 }
0x1886   :  { %2401 = vmatpush3.bf16.msra.mxu0 %v2732_v31 }
0x1887   :  { %2402 = vmatprep.subr.bf16.mxu0 %v2733_v32 }
0x188a   :  { %2403 = vmatpush3.bf16.msra.mxu0 %v2734_v33  ;;  %v2055_v42 = vpop.f32.mrb[28].mxu1 }
0x188b   :  { %v2056_v36 = vadd.f32 %v2055_v42, %v2016_v35  ;;  %v2601_v54 = vpop.f32.mrb[29].mxu1  ;;  %2571 = vmatprep.subr.bf16.mxu0 %v2942_v1 }
0x188c   :  { %v2058_v37 = vpop.f32.mrb[30].mxu1 }
0x188d   :  { %1672 = vmatmul.mubr.bf16.vlgmr.msra.gmra.mrb[20].mxu0 %v1502_v48  ;;  %v2602_v38 = vpop.f32.mrb[31].mxu1  ;;  %v2741_v48 = vld [vmem:[#allocation11 + $0x70] sm:$0xff]   ;;  %v2061_v7 = vmax.f32 %v2056_v36, 0.0 }
0x188e   :  { %2572 = vmatpush3.bf16.msra.mxu0 %v2735_v59  ;;  %2587 = vmatprep.mubr.msk.bf16.mxu0 %vm2944_vm6, %v2942_v1 }
0x188f   :  { %2573 = vmatprep.subr.bf16.mxu0 %v2942_v1  ;;  %v2063_v46 = vrot.slane %v2061_v7, 2  ;;  %v2066_v14 = vrot.slane %v2061_v7, 4  ;;  %v2069_v50 = vrot.slane %v2061_v7, 6 }
0x1891   :  { %v2065_v13 = vmax.f32 %v2061_v7, %v2063_v46 }
0x1892   :  { %2574 = vmatpush3.bf16.msra.mxu0 %v2736_v39 }
0x1893   :  { %2575 = vmatprep.subr.bf16.mxu0 %v2942_v1  ;;  %v2068_v16 = vmax.f32 %v2065_v13, %v2066_v14 }
0x1895   :  { %v2071_v23 = vmax.f32 %v2068_v16, %v2069_v50 }
0x1896   :  { %2576 = vmatpush3.bf16.msra.mxu0 %v2737_v49 }
0x1897   :  { %2577 = vmatprep.subr.bf16.mxu0 %v2942_v1  ;;  %v2072_v25 = vpack.c.bf16 %v2071_v23, %v2071_v23 }
0x189a   :  { %2578 = vmatpush3.bf16.msra.mxu0 %v2738_v40 }
0x189b   :  { %2579 = vmatprep.subr.bf16.mxu0 %v2942_v1 }
0x189e   :  { %2580 = vmatpush3.bf16.msra.mxu0 %v2739_v4 }
0x189f   :  { %2581 = vmatprep.subr.bf16.mxu0 %v2942_v1 }
0x18a2   :  { %2582 = vmatpush3.bf16.msra.mxu0 %v2740_v19 }
0x18a3   :  { %2583 = vmatprep.subr.bf16.mxu0 %v2942_v1 }
0x18a6   :  { %2584 = vmatpush3.bf16.msra.mxu0 %v2741_v48 }
0x18a7   :  { %2585 = vmatprep.subr.bf16.mxu0 %v2942_v1 }
0x18aa   :  { %2586 = vmatpush3.bf16.msra.mxu0 %v2742_v41 }
0x18ab   :  { %2603 = vmatprep.subr.bf16.mxu0 %v2942_v1 }
0x1960   :  { %v2404_v44 = vpop.f32.mrb[20].mxu0 }
0x1961   :  { %v2405_v28 = vpop.f32.mrb[21].mxu0 }
0x1962   :  { %v2406_v43 = vadd.f32 %v2405_v28, %v2404_v44  ;;  %v2407_v45 = vpop.f32.mrb[22].mxu0 }
0x1963   :  { %v2408_v51 = vpop.f32.mrb[23].mxu0 }
0x1964   :  { %v1674_v47 = vadd.f32 %v2406_v43, %v2284_v9  ;;  %v2409_v52 = vadd.f32 %v2408_v51, %v2407_v45 }
0x1966   :  { %v1680_v53 = vmax.f32 %v1674_v47, 0.0  ;;  %v1677_v58 = vadd.f32 %v2409_v52, %v2284_v9 }
0x1968   :  { %v1683_v55 = vrot.slane %v1680_v53, 2  ;;  %v1686_v56 = vrot.slane %v1680_v53, 4  ;;  %v1689_v61 = vrot.slane %v1680_v53, 6  ;;  %v1681_v62 = vmax.f32 %v1677_v58, 0.0 }
0x196a   :  { %v1685_v60 = vmax.f32 %v1680_v53, %v1683_v55 }
0x196c   :  { %v1688_v20 = vmax.f32 %v1685_v60, %v1686_v56 }
0x196e   :  { %v1691_v63 = vmax.f32 %v1688_v20, %v1689_v61 }
0x1970   :  { %v1692_v57 = vmax.f32 %v1691_v63, %v1681_v62 }
0x1972   :  { %v1693_v2 = vpack.c.bf16 %v1692_v57, %v1692_v57 }
0x1974   :  { %2588 = vmatmul.mubr.bf16.vlgmr.msra.gmra.mrb[16].mxu0 %v1693_v2 }
0x1975   :  { %2604 = vmatpush3.bf16.msra.mxu0 %v2743_v11  ;;  %2619 = vmatprep.mubr.msk.bf16.mxu0 %vm2944_vm6, %v2942_v1 }
0x1976   :  { %2605 = vmatprep.subr.bf16.mxu0 %v2942_v1 }
0x1979   :  { %2606 = vmatpush3.bf16.msra.mxu0 %v2744_v18 }
0x197a   :  { %2607 = vmatprep.subr.bf16.mxu0 %v2942_v1 }
0x197d   :  { %2608 = vmatpush3.bf16.msra.mxu0 %v2745_v3 }
0x197e   :  { %2609 = vmatprep.subr.bf16.mxu0 %v2942_v1 }
0x1981   :  { %2610 = vmatpush3.bf16.msra.mxu0 %v2746_v10 }
0x1982   :  { %2611 = vmatprep.subr.bf16.mxu0 %v2942_v1 }
0x1985   :  { %2612 = vmatpush3.bf16.msra.mxu0 %v2747_v12 }
0x1986   :  { %2613 = vmatprep.subr.bf16.mxu0 %v2942_v1 }
0x1989   :  { %2614 = vmatpush3.bf16.msra.mxu0 %v2748_v8 }
0x198a   :  { %2615 = vmatprep.subr.bf16.mxu0 %v2942_v1 }
0x198d   :  { %2616 = vmatpush3.bf16.msra.mxu0 %v2749_v15 }
0x198e   :  { %2617 = vmatprep.subr.bf16.mxu0 %v2942_v1 }
0x1991   :  { %2618 = vmatpush3.bf16.msra.mxu0 %v2750_v17 }
0x1994   :  { %2620 = vmatmul.mubr.bf16.vlgmr.msra.gmra.mrb[16].mxu0 %v2072_v25 }
0x1a67   :  { %v2171_v0 = vpop.f32.mrb[16].mxu0 }
0x1a68   :  { %v2623_v26 = vadd.f32 %v2261_v22, %v2171_v0  ;;  %v2621_v27 = vpop.f32.mrb[17].mxu0 }
0x1a69   :  { %v2174_v21 = vpop.f32.mrb[18].mxu0 }
0x1a6a   :  { %2178 = vst [vmem:[#allocation13] sm:$0x3] %v2623_v26  ;;  %v2622_v5 = vpop.f32.mrb[19].mxu0 }
0x1a6b   :  { %2914 = shalt.err (!%p2911_p13)
}
0x1a6c   :  { %s2915_s12 = scalar_lea.hbm %s3690_s13, 32 }
0x1a6d   :  { %p2916_p0 = scmp.ne.s32.totalorder %s3690_s13, %s2915_s12  ;;  %p2919_p1 = scmp.lt.u32.totalorder %s2915_s12, %s3690_s13 }
0x1a6f   :  { %p2921_p2 = pnand %p2919_p1, %p2916_p0 }
0x1a71   :  { %2924 = shalt.err (!%p2921_p2)
}
0x1a72   :  { %2188 = dma.vmem_to_hbm [thread:$0]  %s2186_s20, 32, %s3690_s13, [#allocation5]  }
0x1a73   :  { %2933 = dma.done.wait [#allocation5], 32  }
0x1a74   :  { %2934 = vsyncadd [#allocation5], 4294967264 }
0x1a75   :  { %2192 = vsyncpa [#allocation4], 1 }
0x1a76   :  { %2193 = vsyncpa [#allocation9], 1 }
0x1a77   :  { %2194 = vsyncpa [#allocation12], 1 }
0x1a78   :  { %2195 = vsyncpa [#allocation5], 1 }
0x1a79   :  { %2196 = vsyncpa [#allocation6], 1 }

</bundles_post_ra>
